<compile_context>
chip_gen: v7x
topology: tpu7x:2x2x1
jax: 0.10.0
libtpu: 0.0.40
codegen_flags: <defaults>
</compile_context>

<pallas_src>
import functools
import math

import jax
import jax.numpy as jnp
from jax.experimental import pallas as pl
from jax.experimental.pallas import tpu as pltpu

_MM_BUDGET = 20 * 1024 * 1024    # conservative per-kernel working-set estimate used to pick tiles
_VMEM_LIMIT = 40 * 1024 * 1024   # scoped VMEM limit: > default on v5e/v6e, < v7x's 64 MiB physical


# ----------------------------------------------------------------------------
# helpers
# ----------------------------------------------------------------------------
def _round_up(x, m):
    return (x + m - 1) // m * m


def _divisor_tiles(npad):
    """All 128-multiples that divide npad, largest first."""
    d = npad // 128
    return [128 * i for i in range(d, 0, -1) if d % i == 0]


# ----------------------------------------------------------------------------
# Matmul kernels (linears, 1x1 convs, stride-2 im2col convs).
# Full-K LHS panel resident per grid row; weights streamed once; fused epilogue.
# ----------------------------------------------------------------------------
def _mm_kernel(x_ref, w_ref, b_ref, o_ref, *, activation):
    r = jnp.dot(x_ref[...], w_ref[...], preferred_element_type=jnp.float32) + b_ref[...]
    if activation == "silu":
        r = r * jax.nn.sigmoid(r)
    o_ref[...] = r.astype(o_ref.dtype)


def _mm_add_kernel(x_ref, w_ref, b_ref, r_ref, o_ref, *, activation):
    r = jnp.dot(x_ref[...], w_ref[...], preferred_element_type=jnp.float32) + b_ref[...]
    if activation == "silu":
        r = r * jax.nn.sigmoid(r)
    r = r + r_ref[...].astype(jnp.float32)
    o_ref[...] = r.astype(o_ref.dtype)


def _mm_call(mp, kp, np_, activation, has_add):
    # M-split (2 tiles) only when M is large: keeps a >=2 parallel axis for v7x's two cores
    # at negligible extra weight traffic on the 16x16 layers.
    m_tiles = 2 if (mp >= 256 and mp % 16 == 0) else 1
    tm = mp // m_tiles
    tn = 128
    for cand in _divisor_tiles(np_):
        cost = (2 * tm * kp * 2 + 2 * kp * cand * 2 + 2 * tm * cand * 2
                + (2 * tm * cand * 2 if has_add else 0) + 4 * cand)
        if cost <= _MM_BUDGET:
            tn = cand
            break
    in_specs = [
        pl.BlockSpec((tm, kp), lambda i, j: (i, 0)),   # full-K LHS panel, resident across j
        pl.BlockSpec((kp, tn), lambda i, j: (0, j)),   # weights stream through VMEM once
        pl.BlockSpec((1, tn), lambda i, j: (0, j)),    # bias
    ]
    if has_add:
        in_specs.append(pl.BlockSpec((tm, tn), lambda i, j: (i, j)))
        kern = functools.partial(_mm_add_kernel, activation=activation)
    else:
        kern = functools.partial(_mm_kernel, activation=activation)
    return pl.pallas_call(
        kern,
        out_shape=jax.ShapeDtypeStruct((mp, np_), jnp.bfloat16),
        grid=(m_tiles, np_ // tn),
        in_specs=in_specs,
        out_specs=pl.BlockSpec((tm, tn), lambda i, j: (i, j)),
        compiler_params=pltpu.CompilerParams(
            dimension_semantics=("parallel", "parallel"),
            vmem_limit_bytes=_VMEM_LIMIT),
    )


def matmul(x, layer, activation="none", add=None, extra_bias=None):
    """x: (M, K); layer: {"w": (Kp, Np) bf16 padded, "b": (1, n) f32 true-width}."""
    m, k = x.shape
    kp, np_ = layer["w"].shape
    n = layer["b"].shape[1]
    mp = _round_up(m, 8)
    xb = x.astype(jnp.bfloat16)
    if (mp, kp) != (m, k):
        xb = jnp.pad(xb, ((0, mp - m), (0, kp - k)))
    b = layer["b"]
    if extra_bias is not None:
        b = b + extra_bias.astype(jnp.float32)
    if b.shape[1] != np_:
        b = jnp.pad(b, ((0, 0), (0, np_ - b.shape[1])))
    if add is None:
        out = _mm_call(mp, kp, np_, activation, False)(xb, layer["w"], b)
    else:
        r = add.astype(jnp.bfloat16)
        if r.shape != (mp, np_):
            r = jnp.pad(r, ((0, mp - r.shape[0]), (0, np_ - r.shape[1])))
        out = _mm_call(mp, kp, np_, activation, True)(xb, layer["w"], b, r)
    return out[:m, :n]


# ----------------------------------------------------------------------------
# 3x3 stride-1 conv: in-kernel 9-tap shifted-matmul reduction (no im2col in HBM).
# Input is zero-padded spatially, flattened to (N*Hp*Wp, Cp) rows and kept resident in VMEM;
# tap (di, dj) is the row-shift di*Wp + dj of that flat array.
# ----------------------------------------------------------------------------
def _conv3x3_kernel(x_ref, w_ref, b_ref, o_ref, *, cp, wpad, m_out, activation):
    acc = jnp.zeros(o_ref.shape, jnp.float32)
    for di in range(3):
        for dj in range(3):
            t = di * 3 + dj
            off = di * wpad + dj
            acc = acc + jnp.dot(x_ref[off:off + m_out, :],
                                w_ref[t * cp:(t + 1) * cp, :],
                                preferred_element_type=jnp.float32)
    r = acc + b_ref[...]
    if activation == "silu":
        r = r * jax.nn.sigmoid(r)
    o_ref[...] = r.astype(o_ref.dtype)


def _conv3x3_add_kernel(x_ref, w_ref, b_ref, r_ref, o_ref, *, cp, wpad, m_out, activation):
    acc = jnp.zeros(o_ref.shape, jnp.float32)
    for di in range(3):
        for dj in range(3):
            t = di * 3 + dj
            off = di * wpad + dj
            acc = acc + jnp.dot(x_ref[off:off + m_out, :],
                                w_ref[t * cp:(t + 1) * cp, :],
                                preferred_element_type=jnp.float32)
    r = acc + b_ref[...]
    if activation == "silu":
        r = r * jax.nn.sigmoid(r)
    r = r + r_ref[...].astype(jnp.float32)
    o_ref[...] = r.astype(o_ref.dtype)


def _conv3x3_call(mx, cp, m_out, np_, wpad, activation, has_add):
    cands = _divisor_tiles(np_)
    # prefer >= 2 output tiles (free: weights stream once regardless) so v7x can use both cores
    pref = [t for t in cands if np_ // t >= 2] + [t for t in cands if np_ // t < 2]
    tn = 128
    for cand in pref:
        cost = (2 * mx * cp * 2 + 2 * 9 * cp * cand * 2 + 2 * m_out * cand * 2
                + m_out * cand * 4 + (2 * m_out * cand * 2 if has_add else 0))
        if cost <= _MM_BUDGET:
            tn = cand
            break
    in_specs = [
        pl.BlockSpec((mx, cp), lambda j: (0, 0)),        # flat padded activation, resident
        pl.BlockSpec((9 * cp, tn), lambda j: (0, j)),    # all 9 taps of a weight column panel
        pl.BlockSpec((1, tn), lambda j: (0, j)),
    ]
    if has_add:
        in_specs.append(pl.BlockSpec((m_out, tn), lambda j: (0, j)))
        kern = _conv3x3_add_kernel
    else:
        kern = _conv3x3_kernel
    return pl.pallas_call(
        functools.partial(kern, cp=cp, wpad=wpad, m_out=m_out, activation=activation),
        out_shape=jax.ShapeDtypeStruct((m_out, np_), jnp.bfloat16),
        grid=(np_ // tn,),
        in_specs=in_specs,
        out_specs=pl.BlockSpec((m_out, tn), lambda j: (0, j)),
        compiler_params=pltpu.CompilerParams(
            dimension_semantics=("parallel",),
            vmem_limit_bytes=_VMEM_LIMIT),
    )


def _conv3x3_s1(x, layer, activation="none", add=None, extra_bias=None):
    n, h, w_, c = x.shape
    kp, np_ = layer["w"].shape
    cp = kp // 9
    cout = layer["b"].shape[1]
    hpad, wpad = h + 2, w_ + 2
    m_valid = n * hpad * wpad
    m_out = _round_up(m_valid, 8)
    mx = _round_up(m_out + 2 * wpad + 2, 8)          # extra zero rows so border taps stay in-bounds
    xb = x.astype(jnp.bfloat16)
    xpad = jnp.pad(xb, ((0, 0), (1, 1), (1, 1), (0, cp - c)))
    xflat = jnp.pad(xpad.reshape(m_valid, cp), ((0, mx - m_valid), (0, 0)))
    b = layer["b"]
    if extra_bias is not None:
        b = b + extra_bias.astype(jnp.float32)       # time-embedding broadcast add folded into bias
    if b.shape[1] != np_:
        b = jnp.pad(b, ((0, 0), (0, np_ - b.shape[1])))
    args = [xflat, layer["w"], b]
    has_add = add is not None
    if has_add:
        r = jnp.pad(add.astype(jnp.bfloat16),
                    ((0, 0), (0, 2), (0, 2), (0, np_ - add.shape[-1])))
        r = jnp.pad(r.reshape(m_valid, np_), ((0, m_out - m_valid), (0, 0)))
        args.append(r)
    out = _conv3x3_call(mx, cp, m_out, np_, wpad, activation, has_add)(*args)
    return out[:m_valid].reshape(n, hpad, wpad, np_)[:, :h, :w_, :cout]


def conv2d(x, layer, ksize, stride=1, padding=0, activation="none", add=None, extra_bias=None):
    n, h, w_, c = x.shape
    cout = layer["b"].shape[1]
    if ksize == 1:
        tokens = x.astype(jnp.bfloat16).reshape(n * h * w_, c)
        add_t = None if add is None else add.reshape(n * h * w_, -1)
        out = matmul(tokens, layer, activation=activation, add=add_t, extra_bias=extra_bias)
        return out.reshape(n, h, w_, cout)
    if ksize == 3 and stride == 1 and padding == 1:
        return _conv3x3_s1(x, layer, activation=activation, add=add, extra_bias=extra_bias)
    # TODO(synk): the three stride-2 downsample convs keep the XLA im2col path; their patch
    # tensors are < 1 MiB at this latent size so an in-kernel tap reduction is not worth it.
    xb = x.astype(jnp.bfloat16)
    xp = jnp.pad(xb, ((0, 0), (padding, padding), (padding, padding), (0, 0)))
    ho = (h + 2 * padding - ksize) // stride + 1
    wo = (w_ + 2 * padding - ksize) // stride + 1
    cols = []
    for di in range(ksize):
        for dj in range(ksize):
            cols.append(xp[:, di: di + stride * (ho - 1) + 1: stride,
                           dj: dj + stride * (wo - 1) + 1: stride, :])
    patches = jnp.concatenate(cols, axis=-1).reshape(n * ho * wo, ksize * ksize * c)
    add_t = None if add is None else add.reshape(n * ho * wo, -1)
    out = matmul(patches, layer, activation=activation, add=add_t, extra_bias=extra_bias)
    return out.reshape(n, ho, wo, cout)


# ----------------------------------------------------------------------------
# Fused GroupNorm(32) (+ optional SiLU): one kernel, centered two-pass statistics.
# ----------------------------------------------------------------------------
def _gn_kernel(x_ref, w_ref, b_ref, o_ref, *, groups, apply_silu):
    xf = x_ref[...].astype(jnp.float32)                       # (N, HW, C)
    n, hw, c = xf.shape
    cg = c // groups
    cnt = float(hw * cg)
    ci = jax.lax.broadcasted_iota(jnp.int32, (c, groups), 0) // cg
    gi = jax.lax.broadcasted_iota(jnp.int32, (c, groups), 1)
    gm = (ci == gi).astype(jnp.float32)                       # (C, G) group-assignment
    gi2 = jax.lax.broadcasted_iota(jnp.int32, (groups, c), 0)
    ci2 = jax.lax.broadcasted_iota(jnp.int32, (groups, c), 1) // cg
    gmt = (gi2 == ci2).astype(jnp.float32)                    # (G, C)
    s1 = jnp.sum(xf, axis=1)                                  # (N, C)
    mean_g = jnp.dot(s1, gm, preferred_element_type=jnp.float32) / cnt
    mean_c = jnp.dot(mean_g, gmt, preferred_element_type=jnp.float32)
    d = xf - mean_c[:, None, :]
    s2 = jnp.sum(d * d, axis=1)                               # centered -> no E[x^2]-E[x]^2 cancellation
    var_g = jnp.dot(s2, gm, preferred_element_type=jnp.float32) / cnt
    inv_g = jax.lax.rsqrt(var_g + 1e-5)
    inv_c = jnp.dot(inv_g, gmt, preferred_element_type=jnp.float32)
    y = d * inv_c[:, None, :] * w_ref[...] + b_ref[...]
    if apply_silu:
        y = y * jax.nn.sigmoid(y)
    o_ref[...] = y.astype(o_ref.dtype)


def group_norm(x, p, apply_silu=False):
    n, h, w_, c = x.shape
    x3 = x.reshape(n, h * w_, c).astype(jnp.bfloat16)
    y = pl.pallas_call(
        functools.partial(_gn_kernel, groups=32, apply_silu=apply_silu),
        out_shape=jax.ShapeDtypeStruct((n, h * w_, c), jnp.bfloat16),
        compiler_params=pltpu.CompilerParams(vmem_limit_bytes=_VMEM_LIMIT),
    )(x3, p["w"].reshape(1, 1, c), p["b"].reshape(1, 1, c))
    return y.reshape(n, h, w_, c)


# ----------------------------------------------------------------------------
# LayerNorm / GEGLU
# ----------------------------------------------------------------------------
def _layer_norm_kernel(x_ref, w_ref, b_ref, o_ref, *, inv_c):
    x = x_ref[...].astype(jnp.float32)
    mean = jnp.sum(x, axis=-1, keepdims=True) * inv_c
    d = x - mean
    var = jnp.sum(d * d, axis=-1, keepdims=True) * inv_c
    y = d * jax.lax.rsqrt(var + 1e-5)
    o_ref[...] = (y * w_ref[...] + b_ref[...]).astype(o_ref.dtype)


def layer_norm(x, p):
    m, c = x.shape
    return pl.pallas_call(
        functools.partial(_layer_norm_kernel, inv_c=1.0 / c),
        out_shape=jax.ShapeDtypeStruct((m, c), jnp.bfloat16),
    )(x.astype(jnp.bfloat16), p["w"].reshape(1, c), p["b"].reshape(1, c))


_GELU_EXACT = None


def _probe_erf():
    """Check whether lax.erf lowers through Mosaic; fall back to tanh GELU otherwise."""
    def k(x_ref, o_ref):
        o_ref[...] = jax.lax.erf(x_ref[...])
    try:
        jax.block_until_ready(
            pl.pallas_call(k, out_shape=jax.ShapeDtypeStruct((8, 128), jnp.float32))(
                jnp.zeros((8, 128), jnp.float32)))
        return True
    except Exception:
        return False


def _gelu_exact():
    global _GELU_EXACT
    if _GELU_EXACT is None:
        _GELU_EXACT = _probe_erf()
    return _GELU_EXACT


def _geglu_kernel(z_ref, o_ref, *, half, exact):
    xv = z_ref[:, :half].astype(jnp.float32)       # x / gate split inside the kernel (no XLA slices)
    g = z_ref[:, half:].astype(jnp.float32)
    if exact:
        gelu = 0.5 * g * (1.0 + jax.lax.erf(g * (1.0 / math.sqrt(2.0))))
    else:
        # TODO(synk): exact (erf) GELU not lowerable on this Mosaic version; tanh approximation used.
        cst = math.sqrt(2.0 / math.pi)
        gelu = 0.5 * g * (1.0 + jnp.tanh(cst * (g + 0.044715 * g * g * g)))
    o_ref[...] = (xv * gelu).astype(o_ref.dtype)


def geglu_gate(z, channels):
    half = 4 * channels
    m = z.shape[0]
    return pl.pallas_call(
        functools.partial(_geglu_kernel, half=half, exact=_gelu_exact()),
        out_shape=jax.ShapeDtypeStruct((m, half), jnp.bfloat16),
        compiler_params=pltpu.CompilerParams(vmem_limit_bytes=_VMEM_LIMIT),
    )(z)


# ----------------------------------------------------------------------------
# Module forwards (each wrapped in jax.jit so all inter-kernel glue fuses; identical-shaped
# blocks share compiled executables through the jit cache).
# ----------------------------------------------------------------------------
def time_embedding_forward(p, t):
    h = matmul(t, p["l1"], activation="silu")
    return matmul(h, p["l2"])


def residual_block_forward(p, feature, t_silu):
    residue = feature
    h = group_norm(feature, p["gn1"], apply_silu=True)
    t_proj = matmul(t_silu, p["lt"])                              # (1, Cout)
    # time.unsqueeze(-1).unsqueeze(-1) broadcast == folding t_proj into the conv bias.
    h = conv2d(h, p["conv1"], 3, 1, 1, extra_bias=t_proj)
    h = group_norm(h, p["gn2"], apply_silu=True)
    if "res" in p:
        residue = conv2d(residue, p["res"], 1)
    return conv2d(h, p["conv2"], 3, 1, 1, add=residue)            # fused "+ residual_layer(residue)"


def attention_block_forward(p, x):
    # TODO(synk): attention_1/attention_2 (and layer_norm_1/2) are skipped: in the reference forward
    # `x = +residue_short` is a unary plus, so their outputs never reach the result and `context`
    # has no effect on the output.
    n, hh, ww, c = x.shape
    tokens = n * hh * ww
    residue_long = x.reshape(tokens, c)
    h = group_norm(x, p["gn"], apply_silu=False)
    a = matmul(h.reshape(tokens, c), p["conv_in"])                # 1x1 conv == linear on tokens
    residue_short = a
    z = layer_norm(a, p["ln3"])
    z = matmul(z, p["gg1"])                                       # (tokens, 8C)
    z = geglu_gate(z, c)                                          # x * gelu(gate)
    a = matmul(z, p["gg2"], add=residue_short)                    # + fused short skip
    out = matmul(a, p["conv_out"], add=residue_long)              # 1x1 conv + fused long skip
    return out.reshape(n, hh, ww, c)


def upsample_forward(p, x):
    # TODO(synk): reference UpSample has a typo'd ___init__ (no self.conv); intended behavior used.
    # TODO(synk): the 2x nearest upsample still runs as jnp.repeat in XLA (tiny at this latent size).
    x = jnp.repeat(jnp.repeat(x, 2, axis=1), 2, axis=2)
    return conv2d(x, p, 3, 1, 1)


def output_layer_forward(p, x):
    h = group_norm(x, p["gn"], apply_silu=True)
    return conv2d(h, p["conv"], 3, 1, 1)


_time_embedding_jit = jax.jit(time_embedding_forward)
_residual_block_jit = jax.jit(residual_block_forward)
_attention_block_jit = jax.jit(attention_block_forward)
_upsample_jit = jax.jit(upsample_forward)
_output_layer_jit = jax.jit(output_layer_forward)
_conv_s1_jit = jax.jit(lambda p, x: conv2d(x, p, 3, 1, 1))
_conv_s2_jit = jax.jit(lambda p, x: conv2d(x, p, 3, 2, 1))


def apply_switch(layers, x, context, t_silu):
    del context  # never influences the result (unary-plus quirk, see attention_block_forward)
    for entry in layers:
        kind = entry[0]
        if kind == "conv":
            x = (_conv_s1_jit if entry[2] == 1 else _conv_s2_jit)(entry[1], x)
        elif kind == "res":
            x = _residual_block_jit(entry[1], x, t_silu)
        elif kind == "attn":
            x = _attention_block_jit(entry[1], x)
        elif kind == "up":
            x = _upsample_jit(entry[1], x)
    return x


def unet_forward(params, x, context, time_emb):
    # TODO(synk): UNET.forward is not defined in the reference source; this uses the canonical
    # SD-UNet skip-connection forward implied by the encoder/decoder channel plan.
    t32 = time_emb.astype(jnp.float32)
    t_silu = t32 * jax.nn.sigmoid(t32)                    # F.silu(time): identical per block -> hoisted
    skips = []
    for layers in params["encoders"]:
        x = apply_switch(layers, x, context, t_silu)
        skips.append(x)
    x = apply_switch(params["bottleneck"], x, context, t_silu)
    for layers in params["decoders"]:
        x = jnp.concatenate([x, skips.pop()], axis=-1)    # torch.cat((x, skip), dim=1) in NHWC
        x = apply_switch(layers, x, context, t_silu)
    return x


def diffusion_forward(params, latent_nchw, context, time_vec):
    # TODO(synk): reference Diffusion.__init__ omits super().__init__() and forward() references
    # self.unet (attribute is self.u_net); the intended dataflow is implemented here.
    x = jnp.transpose(latent_nchw, (0, 2, 3, 1))          # NCHW -> NHWC
    t = _time_embedding_jit(params["time_embedding"], time_vec)
    x = unet_forward(params["unet"], x, context, t)
    x = _output_layer_jit(params["final"], x)
    return jnp.transpose(x, (0, 3, 1, 2)).astype(jnp.float32)   # NHWC -> NCHW


# ----------------------------------------------------------------------------
# Deterministic parameter construction (synthetic; shapes follow the module __init__).
# Weights are padded to the MXU-friendly layout ONCE here (bf16), never per forward call.
# Biases are stored at their true width (shape carries the logical out-dim for the jitted blocks).
# ----------------------------------------------------------------------------
class _Init:
    def __init__(self, seed):
        self._key = jax.random.PRNGKey(seed)
        self._n = 0

    def normal(self, shape, scale):
        self._n += 1
        return scale * jax.random.normal(jax.random.fold_in(self._key, self._n), shape, jnp.float32)


def make_linear(init, d_in, d_out):
    kp = _round_up(d_in, 128)
    np_ = _round_up(d_out, 128)
    w = init.normal((d_in, d_out), 1.0 / math.sqrt(d_in)).astype(jnp.bfloat16)
    w = jnp.pad(w, ((0, kp - d_in), (0, np_ - d_out)))
    return {"w": w, "b": jnp.zeros((1, d_out), jnp.float32)}


def make_conv(init, c_in, c_out, k, stride=1):
    if k == 3 and stride == 1:
        # per-tap channel-padded layout: rows t*Cp + c == torch_w[cout, c, t//3, t%3]
        cp = _round_up(c_in, 128)
        np_ = _round_up(c_out, 128)
        w = init.normal((9, c_in, c_out), 1.0 / math.sqrt(9 * c_in)).astype(jnp.bfloat16)
        w = jnp.pad(w, ((0, 0), (0, cp - c_in), (0, np_ - c_out))).reshape(9 * cp, np_)
        return {"w": w, "b": jnp.zeros((1, c_out), jnp.float32)}
    # 1x1 convs and stride-2 im2col convs: rows ordered (kh, kw, cin)
    return make_linear(init, k * k * c_in, c_out)


def make_norm(c):
    return {"w": jnp.ones((c,), jnp.float32), "b": jnp.zeros((c,), jnp.float32)}


def make_resblock(init, c_in, c_out, n_time=320):
    # TODO(synk): reference declares n_time=1280 but TimeEmbedding as written emits 320 features;
    # the time projection is sized to the actual 320-dim data flow so the graph is runnable.
    p = {"gn1": make_norm(c_in),
         "conv1": make_conv(init, c_in, c_out, 3),
         "lt": make_linear(init, n_time, c_out),
         "gn2": make_norm(c_out),
         "conv2": make_conv(init, c_out, c_out, 3)}
    if c_in != c_out:
        p["res"] = make_conv(init, c_in, c_out, 1)
    return p


def make_attnblock(init, n_head, n_embed):
    c = n_head * n_embed
    # TODO(synk): layer_norm_1/2 and SelfAttention/CrossAttention parameters are omitted because
    # their results are discarded by the reference forward (`x = +residue_short`).
    return {"gn": make_norm(c),
            "conv_in": make_conv(init, c, c, 1),
            "ln3": make_norm(c),
            "gg1": make_linear(init, c, c * 8),
            "gg2": make_linear(init, c * 4, c),
            "conv_out": make_conv(init, c, c, 1)}


def make_unet(init):
    R, A = make_resblock, make_attnblock
    enc = [
        [("conv", make_conv(init, 4, 320, 3), 1)],
        [("res", R(init, 320, 320)), ("attn", A(init, 8, 40))],
        [("res", R(init, 320, 320)), ("attn", A(init, 8, 40))],
        [("conv", make_conv(init, 320, 320, 3, stride=2), 2)],
        [("res", R(init, 320, 640)), ("attn", A(init, 8, 80))],
        [("res", R(init, 640, 640)), ("attn", A(init, 8, 80))],
        [("conv", make_conv(init, 640, 640, 3, stride=2), 2)],
        [("res", R(init, 640, 1280)), ("attn", A(init, 8, 160))],
        [("res", R(init, 1280, 1280)), ("attn", A(init, 8, 160))],
        [("conv", make_conv(init, 1280, 1280, 3, stride=2), 2)],
        [("res", R(init, 1280, 1280)), ("attn", A(init, 8, 160))],
        [("res", R(init, 1280, 1280)), ("attn", A(init, 8, 160))],
    ]
    mid = [("res", R(init, 1280, 1280)), ("attn", A(init, 8, 160)), ("res", R(init, 1280, 1280))]
    dec = [
        [("res", R(init, 2560, 1280))],
        [("res", R(init, 2560, 1280))],
        [("res", R(init, 2560, 1280)), ("up", make_conv(init, 1280, 1280, 3))],
        [("res", R(init, 2560, 1280)), ("attn", A(init, 8, 160))],
        [("res", R(init, 2560, 1280)), ("attn", A(init, 8, 160))],
        [("res", R(init, 1920, 1280)), ("attn", A(init, 8, 160)), ("up", make_conv(init, 1280, 1280, 3))],
        [("res", R(init, 1920, 640)), ("attn", A(init, 8, 80))],
        # TODO(synk): reference declares UNET_ResidualBlock(1920, 640) here, but the canonical skip
        # forward delivers 640+640=1280 channels; instantiated at the data-consistent width.
        [("res", R(init, 1280, 640)), ("attn", A(init, 8, 80))],
        [("res", R(init, 960, 640)), ("attn", A(init, 8, 80)), ("up", make_conv(init, 640, 640, 3))],
        [("res", R(init, 960, 320)), ("attn", A(init, 8, 40))],
        # TODO(synk): reference declares UNET_AttentionBlock(8, 80) (640 ch) here which cannot
        # consume the 320-channel activation; instantiated at the data-consistent width (8, 40).
        [("res", R(init, 640, 320)), ("attn", A(init, 8, 40))],
        [("res", R(init, 640, 320)), ("attn", A(init, 8, 40))],
    ]
    return {"encoders": enc, "bottleneck": mid, "decoders": dec}


def make_diffusion_params(seed=0):
    init = _Init(seed)
    return {
        "time_embedding": {"l1": make_linear(init, 320, 1280), "l2": make_linear(init, 1280, 320)},
        "unet": make_unet(init),
        "final": {"gn": make_norm(320), "conv": make_conv(init, 320, 4, 3)},
    }


# ----------------------------------------------------------------------------
# main
# ----------------------------------------------------------------------------
if __name__ == "__main__":
    _gelu_exact()  # resolve the erf-lowering probe once, outside any jit trace
    params = make_diffusion_params(0)

    key = jax.random.PRNGKey(0)
    k1, k2, k3 = jax.random.split(key, 3)
    latent = jax.random.normal(k1, (2, 4, 16, 16), jnp.float32)   # NCHW latent, like PyTorch
    context = jax.random.normal(k2, (2, 8, 768), jnp.float32)     # (batch, seq, d_context=768)
    time_vec = jax.random.normal(k3, (1, 320), jnp.float32)       # (1, n_embed=320)

    out = diffusion_forward(params, latent, context, time_vec)
    out = jax.block_until_ready(out)

    assert out.shape == (2, 4, 16, 16), out.shape
    assert bool(jnp.all(jnp.isfinite(out)))
    print("KERNEL_OK")
</pallas_src>

<mosaic_0001>
module attributes {stable_mosaic.version = 11 : i64} {
  func.func @k(%arg0: memref<8x128xf32, #tpu.memory_space<vmem>>, %arg1: memref<8x128xf32, #tpu.memory_space<vmem>>) attributes {dimension_semantics = [], scalar_prefetch = 0 : i64, scratch_operands = 0 : i64, tpu.core_type = #tpu.core_type<tc>} {
    %c0 = arith.constant 0 : index
    %c0_0 = arith.constant 0 : index
    %0 = vector.load %arg0[%c0, %c0_0] : memref<8x128xf32, #tpu.memory_space<vmem>>, vector<8x128xf32>
    %1 = math.erf %0 : vector<8x128xf32>
    %c0_1 = arith.constant 0 : index
    %c0_2 = arith.constant 0 : index
    %2 = vector.load %arg1[%c0_1, %c0_2] : memref<8x128xf32, #tpu.memory_space<vmem>>, vector<8x128xf32>
    tpu.vector_store %arg1[%c0_1, %c0_2], %1 {strides = array<i32>} : memref<8x128xf32, #tpu.memory_space<vmem>>, vector<8x128xf32>,
    return
  }
}

module attributes {stable_mosaic.version = 11 : i64} {
  func.func @_mm_kernel(%arg0: i32, %arg1: i32, %arg2: memref<8x384xbf16, #tpu.memory_space<vmem>>, %arg3: memref<384x1280xbf16, #tpu.memory_space<vmem>>, %arg4: memref<1x1280xf32, #tpu.memory_space<vmem>>, %arg5: memref<8x1280xbf16, #tpu.memory_space<vmem>>) attributes {dimension_semantics = [#tpu.dimension_semantics<parallel>, #tpu.dimension_semantics<parallel>], iteration_bounds = array<i64: 1, 1>, scalar_prefetch = 0 : i64, scratch_operands = 0 : i64, tpu.core_type = #tpu.core_type<tc>, window_params = [{transform_indices = @transform_0, window_bounds = array<i64: 8, 384>}, {transform_indices = @transform_1, window_bounds = array<i64: 384, 1280>}, {transform_indices = @transform_2, window_bounds = array<i64: 1, 1280>}, {transform_indices = @transform_3, window_bounds = array<i64: 8, 1280>}]} {
    %c0 = arith.constant 0 : index
    %c0_0 = arith.constant 0 : index
    %0 = vector.load %arg2[%c0, %c0_0] : memref<8x384xbf16, #tpu.memory_space<vmem>>, vector<8x384xbf16>
    %c0_1 = arith.constant 0 : index
    %c0_2 = arith.constant 0 : index
    %1 = vector.load %arg3[%c0_1, %c0_2] : memref<384x1280xbf16, #tpu.memory_space<vmem>>, vector<384x1280xbf16>
    %cst = arith.constant dense<0.000000e+00> : vector<8x1280xf32>
    %2 = tpu.matmul %0, %1, %cst {dimension_numbers = #tpu.dot_dimension_numbers<[1], [0], [0], [1], [0, 0, 1, 1], [], []>} : vector<8x384xbf16>, vector<384x1280xbf16>, vector<8x1280xf32> -> vector<8x1280xf32>
    %c0_3 = arith.constant 0 : index
    %c0_4 = arith.constant 0 : index
    %3 = vector.load %arg4[%c0_3, %c0_4] : memref<1x1280xf32, #tpu.memory_space<vmem>>, vector<1x1280xf32>
    %4 = vector.broadcast %3 : vector<1x1280xf32> to vector<8x1280xf32>
    %5 = arith.addf %2, %4 : vector<8x1280xf32>
    %6 = arith.negf %5 : vector<8x1280xf32>
    %7 = math.exp %6 : vector<8x1280xf32>
    %cst_5 = arith.constant 1.000000e+00 : f32
    %8 = vector.broadcast %cst_5 : f32 to vector<8x1280xf32>
    %9 = arith.addf %8, %7 : vector<8x1280xf32>
    %10 = arith.divf %8, %9 : vector<8x1280xf32>
    %11 = arith.mulf %5, %10 : vector<8x1280xf32>
    %12 = arith.truncf %11 : vector<8x1280xf32> to vector<8x1280xbf16>
    %c0_6 = arith.constant 0 : index
    %c0_7 = arith.constant 0 : index
    %13 = vector.load %arg5[%c0_6, %c0_7] : memref<8x1280xbf16, #tpu.memory_space<vmem>>, vector<8x1280xbf16>
    tpu.vector_store %arg5[%c0_6, %c0_7], %12 {strides = array<i32>} : memref<8x1280xbf16, #tpu.memory_space<vmem>>, vector<8x1280xbf16>,
    return
  }
  func.func @transform_0(%arg0: i32, %arg1: i32) -> (i32, i32) {
    %c0_i32 = arith.constant 0 : i32
    %c0_i32_0 = arith.constant 0 : i32
    return %arg0, %c0_i32 : i32, i32
  }
  func.func @transform_1(%arg0: i32, %arg1: i32) -> (i32, i32) {
    %c0_i32 = arith.constant 0 : i32
    %c0_i32_0 = arith.constant 0 : i32
    return %c0_i32, %arg1 : i32, i32
  }
  func.func @transform_2(%arg0: i32, %arg1: i32) -> (i32, i32) {
    %c0_i32 = arith.constant 0 : i32
    %c0_i32_0 = arith.constant 0 : i32
    return %c0_i32, %arg1 : i32, i32
  }
  func.func @transform_3(%arg0: i32, %arg1: i32) -> (i32, i32) {
    %c0_i32 = arith.constant 0 : i32
    return %arg0, %arg1 : i32, i32
  }
}

module attributes {stable_mosaic.version = 11 : i64} {
  func.func @_mm_kernel(%arg0: i32, %arg1: i32, %arg2: memref<8x1280xbf16, #tpu.memory_space<vmem>>, %arg3: memref<1280x384xbf16, #tpu.memory_space<vmem>>, %arg4: memref<1x384xf32, #tpu.memory_space<vmem>>, %arg5: memref<8x384xbf16, #tpu.memory_space<vmem>>) attributes {dimension_semantics = [#tpu.dimension_semantics<parallel>, #tpu.dimension_semantics<parallel>], iteration_bounds = array<i64: 1, 1>, scalar_prefetch = 0 : i64, scratch_operands = 0 : i64, tpu.core_type = #tpu.core_type<tc>, window_params = [{transform_indices = @transform_0, window_bounds = array<i64: 8, 1280>}, {transform_indices = @transform_1, window_bounds = array<i64: 1280, 384>}, {transform_indices = @transform_2, window_bounds = array<i64: 1, 384>}, {transform_indices = @transform_3, window_bounds = array<i64: 8, 384>}]} {
    %c0 = arith.constant 0 : index
    %c0_0 = arith.constant 0 : index
    %0 = vector.load %arg2[%c0, %c0_0] : memref<8x1280xbf16, #tpu.memory_space<vmem>>, vector<8x1280xbf16>
    %c0_1 = arith.constant 0 : index
    %c0_2 = arith.constant 0 : index
    %1 = vector.load %arg3[%c0_1, %c0_2] : memref<1280x384xbf16, #tpu.memory_space<vmem>>, vector<1280x384xbf16>
    %cst = arith.constant dense<0.000000e+00> : vector<8x384xf32>
    %2 = tpu.matmul %0, %1, %cst {dimension_numbers = #tpu.dot_dimension_numbers<[1], [0], [0], [1], [0, 0, 1, 1], [], []>} : vector<8x1280xbf16>, vector<1280x384xbf16>, vector<8x384xf32> -> vector<8x384xf32>
    %c0_3 = arith.constant 0 : index
    %c0_4 = arith.constant 0 : index
    %3 = vector.load %arg4[%c0_3, %c0_4] : memref<1x384xf32, #tpu.memory_space<vmem>>, vector<1x384xf32>
    %4 = vector.broadcast %3 : vector<1x384xf32> to vector<8x384xf32>
    %5 = arith.addf %2, %4 : vector<8x384xf32>
    %6 = arith.truncf %5 : vector<8x384xf32> to vector<8x384xbf16>
    %c0_5 = arith.constant 0 : index
    %c0_6 = arith.constant 0 : index
    %7 = vector.load %arg5[%c0_5, %c0_6] : memref<8x384xbf16, #tpu.memory_space<vmem>>, vector<8x384xbf16>
    tpu.vector_store %arg5[%c0_5, %c0_6], %6 {strides = array<i32>} : memref<8x384xbf16, #tpu.memory_space<vmem>>, vector<8x384xbf16>,
    return
  }
  func.func @transform_0(%arg0: i32, %arg1: i32) -> (i32, i32) {
    %c0_i32 = arith.constant 0 : i32
    %c0_i32_0 = arith.constant 0 : i32
    return %arg0, %c0_i32 : i32, i32
  }
  func.func @transform_1(%arg0: i32, %arg1: i32) -> (i32, i32) {
    %c0_i32 = arith.constant 0 : i32
    %c0_i32_0 = arith.constant 0 : i32
    return %c0_i32, %arg1 : i32, i32
  }
  func.func @transform_2(%arg0: i32, %arg1: i32) -> (i32, i32) {
    %c0_i32 = arith.constant 0 : i32
    %c0_i32_0 = arith.constant 0 : i32
    return %c0_i32, %arg1 : i32, i32
  }
  func.func @transform_3(%arg0: i32, %arg1: i32) -> (i32, i32) {
    %c0_i32 = arith.constant 0 : i32
    return %arg0, %arg1 : i32, i32
  }
}

</mosaic_0001>

<bundles_post_ra>
// kernel: tpu_custom_call.1
= control target key start
LH: loop header
LB: loop body
LE: loop exit
PB: predicated region body
PF: predicated region fallthrough
CT: control target
= control target key end

     0   :  { %6 = vsyncpa [#allocation3], 0  ;;  %s127_s0 = inlined_call_operand.hbm [shape: f32[8,128], index: 0, kind: input, shape index: {}]   ;;  %s128_s1 = inlined_call_operand.hbm [shape: f32[8,128], index: 1, kind: output, shape index: {}]  }
   0x1   :  { %7 = vsyncpa [#allocation4], 0  ;;  %s91_s6 = smov [#allocation2]   ;;  %s43_s10 = scalar_lea.hbm %s127_s0, 128 }
   0x2   :  { %s14_s7 = sshll.u32 %s91_s6, 4  ;;  %p44_p0 = scmp.ne.s32.totalorder %s127_s0, %s43_s10  ;;  %s15_s7 = int_to_ptr.vmem [resolvable:$true] %s14_s7 }
   0x3   :  { %p47_p1 = scmp.lt.u32.totalorder %s43_s10, %s127_s0 }
   0x5   :  { %p49_p2 = pnand %p47_p1, %p44_p0 }
   0x7   :  { %52 = shalt.err (!%p49_p2)
}
   0x8   :  { %s53_s15 = scalar_lea.vmem %s15_s7, 128  ;;  %p58_p4 = scmp.lt.s32.totalorder %s15_s7, %s15_s7 }
   0x9   :  { %p54_p3 = scmp.ne.s32.totalorder %s15_s7, %s53_s15  ;;  %p59_p5 = scmp.lt.s32.totalorder %s53_s15, %s53_s15 }
   0xb   :  { %p60_p6 = por %p59_p5, %p58_p4 }
   0xd   :  { %p61_p7 = pnand %p60_p6, %p54_p3 }
   0xf   :  { %64 = shalt.err (!%p61_p7)
}
  0x10   :  { %17 = dma.hbm_to_vmem [thread:$0]  %s127_s0, 128, %s15_s7, [#allocation3]  }
  0x11   :  { %87 = dma.done.wait [#allocation3], 128  }
  0x12   :  { %88 = vsyncadd [#allocation3], 4294967168  ;;  %v21_v0 = vld [vmem:[#allocation2] sm:$0xff]  ;;  %s92_s18 = smov [#allocation5]  }
  0x13   :  { %41 = verf.f32 %v21_v0  ;;  %s30_s19 = sshll.u32 %s92_s18, 4  ;;  %s31_s19 = int_to_ptr.vmem [resolvable:$true] %s30_s19 }
  0x14   :  { %s65_s20 = scalar_lea.vmem %s31_s19, 128  ;;  %p70_p9 = scmp.lt.s32.totalorder %s31_s19, %s31_s19 }
  0x15   :  { %p66_p8 = scmp.ne.s32.totalorder %s31_s19, %s65_s20  ;;  %p71_p10 = scmp.lt.s32.totalorder %s65_s20, %s65_s20 }
  0x17   :  { %p72_p11 = por %p71_p10, %p70_p9 }
  0x19   :  { %p73_p12 = pnand %p72_p11, %p66_p8 }
  0x1d   :  { %v42_v1 = vpop.eup %41 }
  0x1e   :  { %23 = vst [vmem:[#allocation5] sm:$0xff] %v42_v1 }
  0x1f   :  { %76 = shalt.err (!%p73_p12)
}
  0x20   :  { %s77_s0 = scalar_lea.hbm %s128_s1, 128 }
  0x21   :  { %p78_p13 = scmp.ne.s32.totalorder %s128_s1, %s77_s0  ;;  %p81_p0 = scmp.lt.u32.totalorder %s77_s0, %s128_s1 }
  0x23   :  { %p83_p1 = pnand %p81_p0, %p78_p13 }
  0x25   :  { %86 = shalt.err (!%p83_p1)
}
  0x26   :  { %33 = dma.vmem_to_hbm [thread:$0]  %s31_s19, 128, %s128_s1, [#allocation4]  }
  0x27   :  { %89 = dma.done.wait [#allocation4], 128  }
  0x28   :  { %90 = vsyncadd [#allocation4], 4294967168 }
  0x29   :  { %37 = vsyncpa [#allocation3], 1 }
  0x2a   :  { %38 = vsyncpa [#allocation4], 1 }

// kernel: time_embedding_forward.2
= control target key start
LH: loop header
LB: loop body
LE: loop exit
PB: predicated region body
PF: predicated region fallthrough
CT: control target
= control target key end

     0   :  { %8 = vsyncpa [#allocation3], 0  ;;  %s2952_s0 = inlined_call_operand.vmem [shape: bf16[8,384], index: 0, kind: input, shape index: {}]   ;;  %s2953_s1 = inlined_call_operand.hbm [shape: bf16[384,1280], index: 1, kind: input, shape index: {}]   ;;  %s2954_s2 = inlined_call_operand.hbm [shape: f32[1,1280], index: 2, kind: input, shape index: {}]   ;;  %s2955_s3 = inlined_call_operand.vmem [shape: bf16[8,1280], index: 3, kind: output, shape index: {}]  }
   0x1   :  { %9 = vsyncpa [#allocation5], 0  ;;  %s2827_s12 = smov [#allocation2]   ;;  %s2779_s16 = scalar_lea.hbm %s2953_s1, 30720 }
   0x2   :  { %s17_s13 = sshll.u32 %s2827_s12, 4  ;;  %p2780_p0 = scmp.ne.s32.totalorder %s2953_s1, %s2779_s16  ;;  %s18_s13 = int_to_ptr.vmem [resolvable:$true] %s17_s13 }
   0x3   :  { %p2783_p1 = scmp.lt.u32.totalorder %s2779_s16, %s2953_s1 }
   0x5   :  { %p2785_p2 = pnand %p2783_p1, %p2780_p0 }
   0x7   :  { %2788 = shalt.err (!%p2785_p2)
}
   0x8   :  { %s2789_s21 = scalar_lea.vmem %s18_s13, 30720  ;;  %p2794_p4 = scmp.lt.s32.totalorder %s18_s13, %s18_s13 }
   0x9   :  { %p2790_p3 = scmp.ne.s32.totalorder %s18_s13, %s2789_s21  ;;  %p2795_p5 = scmp.lt.s32.totalorder %s2789_s21, %s2789_s21 }
   0xb   :  { %p2796_p6 = por %p2795_p5, %p2794_p4 }
   0xd   :  { %p2797_p7 = pnand %p2796_p6, %p2790_p3 }
   0xf   :  { %2800 = shalt.err (!%p2797_p7)
}
  0x10   :  { %s2828_s22 = smov 640   ;;  %s2829_s23 = smov 40  }
  0x11   :  { %23 = dma.hbm_to_vmem [thread:$0]  %s2953_s1, 30720, %s18_s13, [#allocation3], %s2828_s22, %s2828_s22, %s2829_s23  }
  0x12   :  { %s2830_s26 = smov [#allocation4]   ;;  %s2801_s30 = scalar_lea.hbm %s2954_s2, 160 }
  0x13   :  { %s30_s27 = sshll.u32 %s2830_s26, 4  ;;  %p2802_p8 = scmp.ne.s32.totalorder %s2954_s2, %s2801_s30  ;;  %s31_s27 = int_to_ptr.vmem [resolvable:$true] %s30_s27 }
  0x14   :  { %p2805_p9 = scmp.lt.u32.totalorder %s2801_s30, %s2954_s2 }
  0x16   :  { %p2807_p10 = pnand %p2805_p9, %p2802_p8 }
  0x18   :  { %2810 = shalt.err (!%p2807_p10)
}
  0x19   :  { %s2811_s8 = scalar_lea.vmem %s31_s27, 160  ;;  %p2816_p12 = scmp.lt.s32.totalorder %s31_s27, %s31_s27 }
  0x1a   :  { %p2812_p11 = scmp.ne.s32.totalorder %s31_s27, %s2811_s8  ;;  %p2817_p13 = scmp.lt.s32.totalorder %s2811_s8, %s2811_s8 }
  0x1c   :  { %p2818_p0 = por %p2817_p13, %p2816_p12 }
  0x1e   :  { %p2819_p1 = pnand %p2818_p0, %p2812_p11 }
  0x20   :  { %2822 = shalt.err (!%p2819_p1)
}
  0x21   :  { %33 = dma.hbm_to_vmem [thread:$0]  %s2954_s2, 160, %s31_s27, [#allocation5]  }
  0x22   :  { %2823 = dma.done.wait [#allocation3], 30720  }
  0x23   :  { %2824 = vsyncadd [#allocation3], 4294936576 }
  0x24   :  { %2825 = dma.done.wait [#allocation5], 160  }
  0x25   :  { %2826 = vsyncadd [#allocation5], 4294967136  ;;  %v2831_v0 = vmov 0   ;;  %v2375_v1 = vld [vmem:[#allocation2 + $0x4] ss:$40 sps:$4 sm:$0xff]  }
  0x26   :  { %1621 = vmatprep.mubr.bf16.mxu0 %v2831_v0  ;;  %v2377_v2 = vld [vmem:[#allocation2 + $0x504] ss:$40 sps:$4 sm:$0xff]   ;;  %1548 = vmatprep.subr.bf16.mxu1 %v2375_v1  ;;  %v2379_v3 = vld [vmem:[#allocation2] ss:$40 sps:$4 sm:$0xff]   ;;  %v2381_v5 = vld [vmem:[#allocation2 + $0x54] ss:$40 sps:$4 sm:$0xff]  }
  0x27   :  { %v2380_v4 = vld [vmem:[#allocation2 + $0x500] ss:$40 sps:$4 sm:$0xff]   ;;  %1589 = vmatprep.subr.bf16.mxu0 %v2377_v2  ;;  %1549 = vmatpush1.bf16.msra.mxu1 %v2379_v3  ;;  %v2383_v6 = vld [vmem:[#allocation2 + $0x554] ss:$40 sps:$4 sm:$0xff]   ;;  %v2385_v7 = vld [vmem:[#allocation2 + $0x50] ss:$40 sps:$4 sm:$0xff]  }
  0x28   :  { %1590 = vmatpush1.bf16.msra.mxu0 %v2380_v4  ;;  %1550 = vmatprep.subr.bf16.mxu1 %v2381_v5  ;;  %v2386_v8 = vld [vmem:[#allocation2 + $0x550] ss:$40 sps:$4 sm:$0xff]   ;;  %v2387_v9 = vld [vmem:[#allocation2 + $0xa4] ss:$40 sps:$4 sm:$0xff]   ;;  %v2391_v11 = vld [vmem:[#allocation2 + $0xa0] ss:$40 sps:$4 sm:$0xff]  }
  0x29   :  { %1591 = vmatprep.subr.bf16.mxu0 %v2383_v6  ;;  %v2389_v10 = vld [vmem:[#allocation2 + $0x5a4] ss:$40 sps:$4 sm:$0xff]   ;;  %v2392_v12 = vld [vmem:[#allocation2 + $0x5a0] ss:$40 sps:$4 sm:$0xff]   ;;  %v2393_v13 = vld [vmem:[#allocation2 + $0xf4] ss:$40 sps:$4 sm:$0xff]  }
  0x2a   :  { %v2395_v14 = vld [vmem:[#allocation2 + $0x5f4] ss:$40 sps:$4 sm:$0xff]   ;;  %v2397_v15 = vld [vmem:[#allocation2 + $0xf0] ss:$40 sps:$4 sm:$0xff]   ;;  %v2399_v17 = vld [vmem:[#allocation2 + $0x144] ss:$40 sps:$4 sm:$0xff]  }
  0x2b   :  { %1551 = vmatpush1.bf16.msra.mxu1 %v2385_v7  ;;  %v2398_v16 = vld [vmem:[#allocation2 + $0x5f0] ss:$40 sps:$4 sm:$0xff]   ;;  %v2401_v18 = vld [vmem:[#allocation2 + $0x644] ss:$40 sps:$4 sm:$0xff]   ;;  %v2403_v19 = vld [vmem:[#allocation2 + $0x140] ss:$40 sps:$4 sm:$0xff]  }
  0x2c   :  { %1592 = vmatpush1.bf16.msra.mxu0 %v2386_v8  ;;  %1552 = vmatprep.subr.bf16.mxu1 %v2387_v9  ;;  %v2404_v20 = vld [vmem:[#allocation2 + $0x640] ss:$40 sps:$4 sm:$0xff]   ;;  %v2405_v21 = vld [vmem:[#allocation2 + $0x194] ss:$40 sps:$4 sm:$0xff]   ;;  %v2409_v23 = vld [vmem:[#allocation2 + $0x190] ss:$40 sps:$4 sm:$0xff]  }
  0x2d   :  { %1593 = vmatprep.subr.bf16.mxu0 %v2389_v10  ;;  %v2407_v22 = vld [vmem:[#allocation2 + $0x694] ss:$40 sps:$4 sm:$0xff]   ;;  %v2410_v24 = vld [vmem:[#allocation2 + $0x690] ss:$40 sps:$4 sm:$0xff]   ;;  %v2411_v25 = vld [vmem:[#allocation2 + $0x1e4] ss:$40 sps:$4 sm:$0xff]  }
  0x2e   :  { %v2413_v26 = vld [vmem:[#allocation2 + $0x6e4] ss:$40 sps:$4 sm:$0xff]   ;;  %v2415_v27 = vld [vmem:[#allocation2 + $0x1e0] ss:$40 sps:$4 sm:$0xff]   ;;  %v2417_v29 = vld [vmem:[#allocation2 + $0x234] ss:$40 sps:$4 sm:$0xff]  }
  0x2f   :  { %1553 = vmatpush1.bf16.msra.mxu1 %v2391_v11  ;;  %v2416_v28 = vld [vmem:[#allocation2 + $0x6e0] ss:$40 sps:$4 sm:$0xff]   ;;  %v2419_v30 = vld [vmem:[#allocation2 + $0x734] ss:$40 sps:$4 sm:$0xff]   ;;  %v2421_v31 = vld [vmem:[#allocation2 + $0x230] ss:$40 sps:$4 sm:$0xff]  }
  0x30   :  { %1594 = vmatpush1.bf16.msra.mxu0 %v2392_v12  ;;  %1554 = vmatprep.subr.bf16.mxu1 %v2393_v13  ;;  %v2422_v32 = vld [vmem:[#allocation2 + $0x730] ss:$40 sps:$4 sm:$0xff]   ;;  %v2423_v33 = vld [vmem:[#allocation2 + $0x284] ss:$40 sps:$4 sm:$0xff]   ;;  %v2427_v34 = vld [vmem:[#allocation2 + $0x14] ss:$40 sps:$4 sm:$0xff]  }
  0x31   :  { %1595 = vmatprep.subr.bf16.mxu0 %v2395_v14  ;;  %v2425_v35 = vld [vmem:[#allocation2 + $0x10] ss:$40 sps:$4 sm:$0xff]   ;;  %v2880_v36 = vld [vmem:[%s2952_s0 + $0x8] ss:$0 sps:$4 sm:$0xff]   ;;  %v2430_v38 = vld [vmem:[#allocation2 + $0x2d4] ss:$40 sps:$4 sm:$0xff]  }
  0x32   :  { %v2428_v37 = vld [vmem:[#allocation2 + $0x280] ss:$40 sps:$4 sm:$0xff]   ;;  %v2434_v39 = vld [vmem:[#allocation2 + $0x64] ss:$40 sps:$4 sm:$0xff]   ;;  %v2435_v41 = vld [vmem:[#allocation2 + $0x2d0] ss:$40 sps:$4 sm:$0xff]  }
  0x33   :  { %1555 = vmatpush1.bf16.msra.mxu1 %v2397_v15  ;;  %v2432_v40 = vld [vmem:[#allocation2 + $0x60] ss:$40 sps:$4 sm:$0xff]   ;;  %v2436_v42 = vld [vmem:[#allocation2 + $0x324] ss:$40 sps:$4 sm:$0xff]   ;;  %v2440_v43 = vld [vmem:[#allocation2 + $0xb4] ss:$40 sps:$4 sm:$0xff]  }
  0x34   :  { %1596 = vmatpush1.bf16.msra.mxu0 %v2398_v16  ;;  %1556 = vmatprep.subr.bf16.mxu1 %v2399_v17  ;;  %v2438_v44 = vld [vmem:[#allocation2 + $0xb0] ss:$40 sps:$4 sm:$0xff]   ;;  %v2441_v45 = vld [vmem:[#allocation2 + $0x320] ss:$40 sps:$4 sm:$0xff]   ;;  %v2442_v46 = vld [vmem:[#allocation2 + $0x374] ss:$40 sps:$4 sm:$0xff]  }
  0x35   :  { %1597 = vmatprep.subr.bf16.mxu0 %v2401_v18  ;;  %v2446_v47 = vld [vmem:[#allocation2 + $0x104] ss:$40 sps:$4 sm:$0xff]   ;;  %v2444_v48 = vld [vmem:[#allocation2 + $0x100] ss:$40 sps:$4 sm:$0xff]   ;;  %v2447_v50 = vld [vmem:[#allocation2 + $0x370] ss:$40 sps:$4 sm:$0xff]  }
  0x36   :  { %v41_v49 = vld [vmem:[%s2952_s0] sm:$0xff]  ;;  %v2452_v53 = vld [vmem:[#allocation2 + $0x154] ss:$40 sps:$4 sm:$0xff]   ;;  %v2450_v54 = vld [vmem:[#allocation2 + $0x150] ss:$40 sps:$4 sm:$0xff]  }
  0x37   :  { %1557 = vmatpush1.bf16.msra.mxu1 %v2403_v19  ;;  %v2448_v51 = vld [vmem:[#allocation2 + $0x3c4] ss:$40 sps:$4 sm:$0xff]   ;;  %v2886_v52 = vcombine.high %v41_v49, %v41_v49  ;;  %v2453_v55 = vld [vmem:[#allocation2 + $0x3c0] ss:$40 sps:$4 sm:$0xff]   ;;  %v2454_v56 = vld [vmem:[#allocation2 + $0x414] ss:$40 sps:$4 sm:$0xff]   ;;  %v2890_v7 = vcombine.low %v41_v49, %v41_v49 }
  0x38   :  { %1598 = vmatpush1.bf16.msra.mxu0 %v2404_v20  ;;  %1558 = vmatprep.subr.bf16.mxu1 %v2405_v21  ;;  %v2458_v57 = vld [vmem:[#allocation2 + $0x1a4] ss:$40 sps:$4 sm:$0xff]   ;;  %v2456_v58 = vld [vmem:[#allocation2 + $0x1a0] ss:$40 sps:$4 sm:$0xff]   ;;  %v2459_v59 = vld [vmem:[#allocation2 + $0x410] ss:$40 sps:$4 sm:$0xff]  }
  0x39   :  { %1599 = vmatprep.subr.bf16.mxu0 %v2407_v22  ;;  %1580 = vmatprep.mubr.bf16.mxu1 %v2886_v52  ;;  %v2460_v60 = vld [vmem:[#allocation2 + $0x464] ss:$40 sps:$4 sm:$0xff]   ;;  %v2464_v61 = vld [vmem:[#allocation2 + $0x1f4] ss:$40 sps:$4 sm:$0xff]   ;;  %v2462_v62 = vld [vmem:[#allocation2 + $0x1f0] ss:$40 sps:$4 sm:$0xff]  }
  0x3a   :  { %v2465_v63 = vld [vmem:[#allocation2 + $0x460] ss:$40 sps:$4 sm:$0xff]   ;;  %v2466_v1 = vld [vmem:[#allocation2 + $0x4b4] ss:$40 sps:$4 sm:$0xff]   ;;  %v2470_v2 = vld [vmem:[#allocation2 + $0x244] ss:$40 sps:$4 sm:$0xff]  }
  0x3b   :  { %1559 = vmatpush1.bf16.msra.mxu1 %v2409_v23  ;;  %v2468_v3 = vld [vmem:[#allocation2 + $0x240] ss:$40 sps:$4 sm:$0xff]   ;;  %v2471_v4 = vld [vmem:[#allocation2 + $0x4b0] ss:$40 sps:$4 sm:$0xff]   ;;  %v2476_v5 = vld [vmem:[#allocation2 + $0xc] ss:$40 sps:$4 sm:$0xff]  }
  0x3c   :  { %1600 = vmatpush1.bf16.msra.mxu0 %v2410_v24  ;;  %1560 = vmatprep.subr.bf16.mxu1 %v2411_v25  ;;  %v2479_v6 = vld [vmem:[#allocation2 + $0x294] ss:$40 sps:$4 sm:$0xff]   ;;  %v2474_v8 = vld [vmem:[#allocation2 + $0x8] ss:$40 sps:$4 sm:$0xff]   ;;  %v2485_v11 = vld [vmem:[#allocation2 + $0x2e4] ss:$40 sps:$4 sm:$0xff]  }
  0x3d   :  { %1601 = vmatprep.subr.bf16.mxu0 %v2413_v26  ;;  %v2477_v9 = vld [vmem:[#allocation2 + $0x290] ss:$40 sps:$4 sm:$0xff]   ;;  %v2482_v10 = vld [vmem:[#allocation2 + $0x5c] ss:$40 sps:$4 sm:$0xff]   ;;  %v2483_v13 = vld [vmem:[#allocation2 + $0x2e0] ss:$40 sps:$4 sm:$0xff]  }
  0x3e   :  { %v2480_v12 = vld [vmem:[#allocation2 + $0x58] ss:$40 sps:$4 sm:$0xff]   ;;  %v2488_v14 = vld [vmem:[#allocation2 + $0xac] ss:$40 sps:$4 sm:$0xff]   ;;  %v2486_v16 = vld [vmem:[#allocation2 + $0xa8] ss:$40 sps:$4 sm:$0xff]  }
  0x3f   :  { %1561 = vmatpush1.bf16.msra.mxu1 %v2415_v27  ;;  %v2491_v15 = vld [vmem:[#allocation2 + $0x334] ss:$40 sps:$4 sm:$0xff]   ;;  %v2489_v17 = vld [vmem:[#allocation2 + $0x330] ss:$40 sps:$4 sm:$0xff]   ;;  %v2497_v19 = vld [vmem:[#allocation2 + $0x384] ss:$40 sps:$4 sm:$0xff]  }
  0x40   :  { %1602 = vmatpush1.bf16.msra.mxu0 %v2416_v28  ;;  %1562 = vmatprep.subr.bf16.mxu1 %v2417_v29  ;;  %v2494_v18 = vld [vmem:[#allocation2 + $0xfc] ss:$40 sps:$4 sm:$0xff]   ;;  %v2492_v20 = vld [vmem:[#allocation2 + $0xf8] ss:$40 sps:$4 sm:$0xff]   ;;  %v2500_v22 = vld [vmem:[#allocation2 + $0x14c] ss:$40 sps:$4 sm:$0xff]  }
  0x41   :  { %1603 = vmatprep.subr.bf16.mxu0 %v2419_v30  ;;  %v2495_v21 = vld [vmem:[#allocation2 + $0x380] ss:$40 sps:$4 sm:$0xff]   ;;  %v2503_v23 = vld [vmem:[#allocation2 + $0x3d4] ss:$40 sps:$4 sm:$0xff]   ;;  %v2501_v25 = vld [vmem:[#allocation2 + $0x3d0] ss:$40 sps:$4 sm:$0xff]  }
  0x42   :  { %v2498_v24 = vld [vmem:[#allocation2 + $0x148] ss:$40 sps:$4 sm:$0xff]   ;;  %v2506_v26 = vld [vmem:[#allocation2 + $0x19c] ss:$40 sps:$4 sm:$0xff]   ;;  %v2504_v28 = vld [vmem:[#allocation2 + $0x198] ss:$40 sps:$4 sm:$0xff]  }
  0x43   :  { %1563 = vmatpush1.bf16.msra.mxu1 %v2421_v31  ;;  %v2509_v27 = vld [vmem:[#allocation2 + $0x424] ss:$40 sps:$4 sm:$0xff]   ;;  %v2507_v29 = vld [vmem:[#allocation2 + $0x420] ss:$40 sps:$4 sm:$0xff]   ;;  %v2515_v31 = vld [vmem:[#allocation2 + $0x474] ss:$40 sps:$4 sm:$0xff]  }
  0x44   :  { %1604 = vmatpush1.bf16.msra.mxu0 %v2422_v32  ;;  %1564 = vmatprep.subr.bf16.mxu1 %v2423_v33  ;;  %v2512_v30 = vld [vmem:[#allocation2 + $0x1ec] ss:$40 sps:$4 sm:$0xff]   ;;  %v2510_v32 = vld [vmem:[#allocation2 + $0x1e8] ss:$40 sps:$4 sm:$0xff]  }
  0x45   :  { %1712 = vmatprep.subr.bf16.mxu0 %v2427_v34  ;;  %v2513_v33 = vld [vmem:[#allocation2 + $0x470] ss:$40 sps:$4 sm:$0xff]   ;;  %v2518_v34 = vld [vmem:[#allocation2 + $0x23c] ss:$40 sps:$4 sm:$0xff]  }
  0x46   :  { %v2534_v49 = vld [vmem:[#allocation2 + $0x328] ss:$40 sps:$4 sm:$0xff]  }
  0x47   :  { %1622 = vmatmul.mubr.bf16.vlgmr.msra.gmra.mrb[0].mxu0 %v2880_v36  ;;  %1565 = vmatpush1.bf16.msra.mxu1 %v2428_v37  ;;  %v2516_v37 = vld [vmem:[#allocation2 + $0x238] ss:$40 sps:$4 sm:$0xff]  }
  0x48   :  { %1713 = vmatpush1.bf16.msra.mxu0 %v2425_v35  ;;  %1566 = vmatprep.subr.bf16.mxu1 %v2430_v38  ;;  %v2521_v35 = vld [vmem:[#allocation2 + $0x4c4] ss:$40 sps:$4 sm:$0xff]   ;;  %v2519_v38 = vld [vmem:[#allocation2 + $0x4c0] ss:$40 sps:$4 sm:$0xff]  }
  0x49   :  { %1714 = vmatprep.subr.bf16.mxu0 %v2434_v39  ;;  %1744 = vmatprep.mubr.bf16.mxu0 %v2886_v52  ;;  %v2524_v39 = vld [vmem:[#allocation2 + $0x28c] ss:$40 sps:$4 sm:$0xff]  }
  0x4b   :  { %1567 = vmatpush1.bf16.msra.mxu1 %v2435_v41  ;;  %v2522_v41 = vld [vmem:[#allocation2 + $0x288] ss:$40 sps:$4 sm:$0xff]  }
  0x4c   :  { %1715 = vmatpush1.bf16.msra.mxu0 %v2432_v40  ;;  %1568 = vmatprep.subr.bf16.mxu1 %v2436_v42  ;;  %v2527_v40 = vld [vmem:[#allocation2 + $0x514] ss:$40 sps:$4 sm:$0xff]   ;;  %v2525_v42 = vld [vmem:[#allocation2 + $0x510] ss:$40 sps:$4 sm:$0xff]  }
  0x4d   :  { %1716 = vmatprep.subr.bf16.mxu0 %v2440_v43  ;;  %v2530_v43 = vld [vmem:[#allocation2 + $0x2dc] ss:$40 sps:$4 sm:$0xff]  }
  0x4f   :  { %1569 = vmatpush1.bf16.msra.mxu1 %v2441_v45  ;;  %v2528_v45 = vld [vmem:[#allocation2 + $0x2d8] ss:$40 sps:$4 sm:$0xff]  }
  0x50   :  { %1717 = vmatpush1.bf16.msra.mxu0 %v2438_v44  ;;  %1570 = vmatprep.subr.bf16.mxu1 %v2442_v46  ;;  %v2533_v44 = vld [vmem:[#allocation2 + $0x564] ss:$40 sps:$4 sm:$0xff]   ;;  %v2531_v46 = vld [vmem:[#allocation2 + $0x560] ss:$40 sps:$4 sm:$0xff]  }
  0x51   :  { %1718 = vmatprep.subr.bf16.mxu0 %v2446_v47  ;;  %v2536_v47 = vld [vmem:[#allocation2 + $0x32c] ss:$40 sps:$4 sm:$0xff]  }
  0x53   :  { %1571 = vmatpush1.bf16.msra.mxu1 %v2447_v50  ;;  %v2537_v50 = vld [vmem:[#allocation2 + $0x5b0] ss:$40 sps:$4 sm:$0xff]  }
  0x54   :  { %1719 = vmatpush1.bf16.msra.mxu0 %v2444_v48  ;;  %1572 = vmatprep.subr.bf16.mxu1 %v2448_v51  ;;  %v2539_v48 = vld [vmem:[#allocation2 + $0x5b4] ss:$40 sps:$4 sm:$0xff]  }
  0x55   :  { %1720 = vmatprep.subr.bf16.mxu0 %v2452_v53  ;;  %v2542_v51 = vld [vmem:[#allocation2 + $0x37c] ss:$40 sps:$4 sm:$0xff]  }
  0x56   :  { %v2545_v53 = vld [vmem:[#allocation2 + $0x604] ss:$40 sps:$4 sm:$0xff]  }
  0x57   :  { %1573 = vmatpush1.bf16.msra.mxu1 %v2453_v55  ;;  %v2543_v55 = vld [vmem:[#allocation2 + $0x600] ss:$40 sps:$4 sm:$0xff]  }
  0x58   :  { %1721 = vmatpush1.bf16.msra.mxu0 %v2450_v54  ;;  %1574 = vmatprep.subr.bf16.mxu1 %v2454_v56  ;;  %v2540_v54 = vld [vmem:[#allocation2 + $0x378] ss:$40 sps:$4 sm:$0xff]   ;;  %v2548_v56 = vld [vmem:[#allocation2 + $0x3cc] ss:$40 sps:$4 sm:$0xff]  }
  0x59   :  { %1722 = vmatprep.subr.bf16.mxu0 %v2458_v57  ;;  %v2551_v57 = vld [vmem:[#allocation2 + $0x654] ss:$40 sps:$4 sm:$0xff]  }
  0x5b   :  { %1575 = vmatpush1.bf16.msra.mxu1 %v2459_v59  ;;  %v2549_v59 = vld [vmem:[#allocation2 + $0x650] ss:$40 sps:$4 sm:$0xff]  }
  0x5c   :  { %1723 = vmatpush1.bf16.msra.mxu0 %v2456_v58  ;;  %1576 = vmatprep.subr.bf16.mxu1 %v2460_v60  ;;  %v2546_v58 = vld [vmem:[#allocation2 + $0x3c8] ss:$40 sps:$4 sm:$0xff]   ;;  %v2554_v60 = vld [vmem:[#allocation2 + $0x41c] ss:$40 sps:$4 sm:$0xff]  }
  0x5d   :  { %1724 = vmatprep.subr.bf16.mxu0 %v2464_v61  ;;  %v2557_v61 = vld [vmem:[#allocation2 + $0x6a4] ss:$40 sps:$4 sm:$0xff]  }
  0x5f   :  { %1577 = vmatpush1.bf16.msra.mxu1 %v2465_v63  ;;  %v2555_v63 = vld [vmem:[#allocation2 + $0x6a0] ss:$40 sps:$4 sm:$0xff]  }
  0x60   :  { %1725 = vmatpush1.bf16.msra.mxu0 %v2462_v62  ;;  %1578 = vmatprep.subr.bf16.mxu1 %v2466_v1  ;;  %v2552_v62 = vld [vmem:[#allocation2 + $0x418] ss:$40 sps:$4 sm:$0xff]   ;;  %v2560_v1 = vld [vmem:[#allocation2 + $0x46c] ss:$40 sps:$4 sm:$0xff]  }
  0x61   :  { %1726 = vmatprep.subr.bf16.mxu0 %v2470_v2  ;;  %v2563_v2 = vld [vmem:[#allocation2 + $0x6f4] ss:$40 sps:$4 sm:$0xff]  }
  0x63   :  { %1579 = vmatpush1.bf16.msra.mxu1 %v2471_v4  ;;  %v2561_v4 = vld [vmem:[#allocation2 + $0x6f0] ss:$40 sps:$4 sm:$0xff]  }
  0x64   :  { %1727 = vmatpush1.bf16.msra.mxu0 %v2468_v3  ;;  %1630 = vmatprep.subr.bf16.mxu1 %v2476_v5  ;;  %v2558_v3 = vld [vmem:[#allocation2 + $0x468] ss:$40 sps:$4 sm:$0xff]   ;;  %v2566_v5 = vld [vmem:[#allocation2 + $0x4bc] ss:$40 sps:$4 sm:$0xff]  }
  0x65   :  { %1728 = vmatprep.subr.bf16.mxu0 %v2479_v6  ;;  %v2569_v6 = vld [vmem:[#allocation2 + $0x744] ss:$40 sps:$4 sm:$0xff]  }
  0x66   :  { %1581 = vmatmul.mubr.bf16.vlgmr.msra.gmra.mrb[0].mxu1 %v2890_v7 }
  0x67   :  { %1631 = vmatpush1.bf16.msra.mxu1 %v2474_v8  ;;  %1662 = vmatprep.mubr.bf16.mxu1 %v2886_v52  ;;  %v2564_v8 = vld [vmem:[#allocation2 + $0x4b8] ss:$40 sps:$4 sm:$0xff]  }
  0x68   :  { %1729 = vmatpush1.bf16.msra.mxu0 %v2477_v9  ;;  %1632 = vmatprep.subr.bf16.mxu1 %v2482_v10  ;;  %v2567_v9 = vld [vmem:[#allocation2 + $0x740] ss:$40 sps:$4 sm:$0xff]   ;;  %v2572_v10 = vld [vmem:[#allocation2 + $0x50c] ss:$40 sps:$4 sm:$0xff]  }
  0x69   :  { %1730 = vmatprep.subr.bf16.mxu0 %v2485_v11  ;;  %v2575_v11 = vld [vmem:[#allocation2 + $0x24] ss:$40 sps:$4 sm:$0xff]  }
  0x6b   :  { %1633 = vmatpush1.bf16.msra.mxu1 %v2480_v12  ;;  %v2570_v12 = vld [vmem:[#allocation2 + $0x508] ss:$40 sps:$4 sm:$0xff]  }
  0x6c   :  { %1731 = vmatpush1.bf16.msra.mxu0 %v2483_v13  ;;  %1634 = vmatprep.subr.bf16.mxu1 %v2488_v14  ;;  %v2573_v13 = vld [vmem:[#allocation2 + $0x20] ss:$40 sps:$4 sm:$0xff]   ;;  %v2578_v14 = vld [vmem:[#allocation2 + $0x55c] ss:$40 sps:$4 sm:$0xff]  }
  0x6d   :  { %1732 = vmatprep.subr.bf16.mxu0 %v2491_v15  ;;  %v2581_v15 = vld [vmem:[#allocation2 + $0x74] ss:$40 sps:$4 sm:$0xff]  }
  0x6f   :  { %1635 = vmatpush1.bf16.msra.mxu1 %v2486_v16  ;;  %v2576_v16 = vld [vmem:[#allocation2 + $0x558] ss:$40 sps:$4 sm:$0xff]  }
  0x70   :  { %1733 = vmatpush1.bf16.msra.mxu0 %v2489_v17  ;;  %1636 = vmatprep.subr.bf16.mxu1 %v2494_v18  ;;  %v2579_v17 = vld [vmem:[#allocation2 + $0x70] ss:$40 sps:$4 sm:$0xff]   ;;  %v2584_v18 = vld [vmem:[#allocation2 + $0x5ac] ss:$40 sps:$4 sm:$0xff]  }
  0x71   :  { %1734 = vmatprep.subr.bf16.mxu0 %v2497_v19  ;;  %v2587_v19 = vld [vmem:[#allocation2 + $0xc4] ss:$40 sps:$4 sm:$0xff]  }
  0x73   :  { %1637 = vmatpush1.bf16.msra.mxu1 %v2492_v20  ;;  %v2582_v20 = vld [vmem:[#allocation2 + $0x5a8] ss:$40 sps:$4 sm:$0xff]  }
  0x74   :  { %1735 = vmatpush1.bf16.msra.mxu0 %v2495_v21  ;;  %1638 = vmatprep.subr.bf16.mxu1 %v2500_v22  ;;  %v2585_v21 = vld [vmem:[#allocation2 + $0xc0] ss:$40 sps:$4 sm:$0xff]   ;;  %v2590_v22 = vld [vmem:[#allocation2 + $0x5fc] ss:$40 sps:$4 sm:$0xff]  }
  0x75   :  { %1736 = vmatprep.subr.bf16.mxu0 %v2503_v23  ;;  %v2593_v23 = vld [vmem:[#allocation2 + $0x114] ss:$40 sps:$4 sm:$0xff]  }
  0x77   :  { %1639 = vmatpush1.bf16.msra.mxu1 %v2498_v24  ;;  %v2588_v24 = vld [vmem:[#allocation2 + $0x5f8] ss:$40 sps:$4 sm:$0xff]  }
  0x78   :  { %1737 = vmatpush1.bf16.msra.mxu0 %v2501_v25  ;;  %1640 = vmatprep.subr.bf16.mxu1 %v2506_v26  ;;  %v2591_v25 = vld [vmem:[#allocation2 + $0x110] ss:$40 sps:$4 sm:$0xff]   ;;  %v2596_v26 = vld [vmem:[#allocation2 + $0x64c] ss:$40 sps:$4 sm:$0xff]  }
  0x79   :  { %1738 = vmatprep.subr.bf16.mxu0 %v2509_v27  ;;  %v2599_v27 = vld [vmem:[#allocation2 + $0x164] ss:$40 sps:$4 sm:$0xff]  }
  0x7b   :  { %1641 = vmatpush1.bf16.msra.mxu1 %v2504_v28  ;;  %v2594_v28 = vld [vmem:[#allocation2 + $0x648] ss:$40 sps:$4 sm:$0xff]  }
  0x7c   :  { %1739 = vmatpush1.bf16.msra.mxu0 %v2507_v29  ;;  %1642 = vmatprep.subr.bf16.mxu1 %v2512_v30  ;;  %v2597_v29 = vld [vmem:[#allocation2 + $0x160] ss:$40 sps:$4 sm:$0xff]   ;;  %v2602_v30 = vld [vmem:[#allocation2 + $0x69c] ss:$40 sps:$4 sm:$0xff]  }
  0x7d   :  { %1740 = vmatprep.subr.bf16.mxu0 %v2515_v31  ;;  %v2605_v31 = vld [vmem:[#allocation2 + $0x1b4] ss:$40 sps:$4 sm:$0xff]  }
  0x7f   :  { %1643 = vmatpush1.bf16.msra.mxu1 %v2510_v32  ;;  %v2600_v32 = vld [vmem:[#allocation2 + $0x698] ss:$40 sps:$4 sm:$0xff]  }
  0x80   :  { %1741 = vmatpush1.bf16.msra.mxu0 %v2513_v33  ;;  %1644 = vmatprep.subr.bf16.mxu1 %v2518_v34  ;;  %v2603_v33 = vld [vmem:[#allocation2 + $0x1b0] ss:$40 sps:$4 sm:$0xff]   ;;  %v2608_v34 = vld [vmem:[#allocation2 + $0x6ec] ss:$40 sps:$4 sm:$0xff]  }
  0x81   :  { %1742 = vmatprep.subr.bf16.mxu0 %v2521_v35  ;;  %v2611_v35 = vld [vmem:[#allocation2 + $0x204] ss:$40 sps:$4 sm:$0xff]  }
  0x83   :  { %1645 = vmatpush1.bf16.msra.mxu1 %v2516_v37  ;;  %v2606_v37 = vld [vmem:[#allocation2 + $0x6e8] ss:$40 sps:$4 sm:$0xff]  }
  0x84   :  { %1743 = vmatpush1.bf16.msra.mxu0 %v2519_v38  ;;  %1646 = vmatprep.subr.bf16.mxu1 %v2524_v39  ;;  %v2609_v38 = vld [vmem:[#allocation2 + $0x200] ss:$40 sps:$4 sm:$0xff]   ;;  %v2614_v39 = vld [vmem:[#allocation2 + $0x73c] ss:$40 sps:$4 sm:$0xff]  }
  0x85   :  { %1753 = vmatprep.subr.bf16.mxu0 %v2527_v40  ;;  %v2617_v40 = vld [vmem:[#allocation2 + $0x254] ss:$40 sps:$4 sm:$0xff]  }
  0x87   :  { %1745 = vmatmul.mubr.bf16.vlgmr.msra.gmra.mrb[4].mxu0 %v2890_v7  ;;  %1647 = vmatpush1.bf16.msra.mxu1 %v2522_v41  ;;  %v2612_v41 = vld [vmem:[#allocation2 + $0x738] ss:$40 sps:$4 sm:$0xff]  }
  0x88   :  { %1754 = vmatpush1.bf16.msra.mxu0 %v2525_v42  ;;  %1648 = vmatprep.subr.bf16.mxu1 %v2530_v43  ;;  %v2615_v42 = vld [vmem:[#allocation2 + $0x250] ss:$40 sps:$4 sm:$0xff]   ;;  %v2620_v43 = vld [vmem:[#allocation2 + $0x1c] ss:$40 sps:$4 sm:$0xff]  }
  0x89   :  { %1755 = vmatprep.subr.bf16.mxu0 %v2533_v44  ;;  %1785 = vmatprep.mubr.bf16.mxu0 %v2831_v0  ;;  %v2623_v44 = vld [vmem:[#allocation2 + $0x2a4] ss:$40 sps:$4 sm:$0xff]  }
  0x8b   :  { %1649 = vmatpush1.bf16.msra.mxu1 %v2528_v45  ;;  %v2618_v45 = vld [vmem:[#allocation2 + $0x18] ss:$40 sps:$4 sm:$0xff]  }
  0x8c   :  { %1756 = vmatpush1.bf16.msra.mxu0 %v2531_v46  ;;  %1650 = vmatprep.subr.bf16.mxu1 %v2536_v47  ;;  %v2621_v46 = vld [vmem:[#allocation2 + $0x2a0] ss:$40 sps:$4 sm:$0xff]   ;;  %v2626_v47 = vld [vmem:[#allocation2 + $0x6c] ss:$40 sps:$4 sm:$0xff]  }
  0x8d   :  { %1757 = vmatprep.subr.bf16.mxu0 %v2539_v48  ;;  %v2629_v48 = vld [vmem:[#allocation2 + $0x2f4] ss:$40 sps:$4 sm:$0xff]  }
  0x8f   :  { %1651 = vmatpush1.bf16.msra.mxu1 %v2534_v49  ;;  %v2624_v49 = vld [vmem:[#allocation2 + $0x68] ss:$40 sps:$4 sm:$0xff]  }
  0x90   :  { %1758 = vmatpush1.bf16.msra.mxu0 %v2537_v50  ;;  %1652 = vmatprep.subr.bf16.mxu1 %v2542_v51  ;;  %v2627_v50 = vld [vmem:[#allocation2 + $0x2f0] ss:$40 sps:$4 sm:$0xff]   ;;  %v2632_v51 = vld [vmem:[#allocation2 + $0xbc] ss:$40 sps:$4 sm:$0xff]  }
  0x91   :  { %1759 = vmatprep.subr.bf16.mxu0 %v2545_v53  ;;  %v2635_v53 = vld [vmem:[#allocation2 + $0x344] ss:$40 sps:$4 sm:$0xff]  }
  0x93   :  { %1653 = vmatpush1.bf16.msra.mxu1 %v2540_v54  ;;  %v2630_v54 = vld [vmem:[#allocation2 + $0xb8] ss:$40 sps:$4 sm:$0xff]  }
  0x94   :  { %1760 = vmatpush1.bf16.msra.mxu0 %v2543_v55  ;;  %1654 = vmatprep.subr.bf16.mxu1 %v2548_v56  ;;  %v2633_v55 = vld [vmem:[#allocation2 + $0x340] ss:$40 sps:$4 sm:$0xff]   ;;  %v2638_v56 = vld [vmem:[#allocation2 + $0x10c] ss:$40 sps:$4 sm:$0xff]  }
  0x95   :  { %1761 = vmatprep.subr.bf16.mxu0 %v2551_v57  ;;  %v2641_v57 = vld [vmem:[#allocation2 + $0x394] ss:$40 sps:$4 sm:$0xff]  }
  0x97   :  { %1655 = vmatpush1.bf16.msra.mxu1 %v2546_v58  ;;  %v2639_v58 = vld [vmem:[#allocation2 + $0x390] ss:$40 sps:$4 sm:$0xff]  }
  0x98   :  { %1762 = vmatpush1.bf16.msra.mxu0 %v2549_v59  ;;  %1656 = vmatprep.subr.bf16.mxu1 %v2554_v60  ;;  %v2644_v59 = vld [vmem:[#allocation2 + $0x15c] ss:$40 sps:$4 sm:$0xff]  }
  0x99   :  { %1763 = vmatprep.subr.bf16.mxu0 %v2557_v61  ;;  %v2647_v60 = vld [vmem:[#allocation2 + $0x3e4] ss:$40 sps:$4 sm:$0xff]   ;;  %v2642_v61 = vld [vmem:[#allocation2 + $0x158] ss:$40 sps:$4 sm:$0xff]  }
  0x9b   :  { %1657 = vmatpush1.bf16.msra.mxu1 %v2552_v62  ;;  %v2650_v62 = vld [vmem:[#allocation2 + $0x1ac] ss:$40 sps:$4 sm:$0xff]  }
  0x9c   :  { %1764 = vmatpush1.bf16.msra.mxu0 %v2555_v63  ;;  %1658 = vmatprep.subr.bf16.mxu1 %v2560_v1  ;;  %v2653_v63 = vld [vmem:[#allocation2 + $0x434] ss:$40 sps:$4 sm:$0xff]   ;;  %v2648_v1 = vld [vmem:[#allocation2 + $0x1a8] ss:$40 sps:$4 sm:$0xff]  }
  0x9d   :  { %1765 = vmatprep.subr.bf16.mxu0 %v2563_v2  ;;  %v2651_v2 = vld [vmem:[#allocation2 + $0x430] ss:$40 sps:$4 sm:$0xff]  }
  0x9f   :  { %1659 = vmatpush1.bf16.msra.mxu1 %v2558_v3  ;;  %v2656_v3 = vld [vmem:[#allocation2 + $0x1fc] ss:$40 sps:$4 sm:$0xff]  }
  0xa0   :  { %1766 = vmatpush1.bf16.msra.mxu0 %v2561_v4  ;;  %1660 = vmatprep.subr.bf16.mxu1 %v2566_v5  ;;  %v2659_v4 = vld [vmem:[#allocation2 + $0x484] ss:$40 sps:$4 sm:$0xff]   ;;  %v2654_v5 = vld [vmem:[#allocation2 + $0x1f8] ss:$40 sps:$4 sm:$0xff]  }
  0xa1   :  { %1767 = vmatprep.subr.bf16.mxu0 %v2569_v6  ;;  %v2657_v6 = vld [vmem:[#allocation2 + $0x480] ss:$40 sps:$4 sm:$0xff]  }
  0xa3   :  { %1661 = vmatpush1.bf16.msra.mxu1 %v2564_v8  ;;  %v2662_v8 = vld [vmem:[#allocation2 + $0x24c] ss:$40 sps:$4 sm:$0xff]  }
  0xa4   :  { %1768 = vmatpush1.bf16.msra.mxu0 %v2567_v9  ;;  %1671 = vmatprep.subr.bf16.mxu1 %v2572_v10  ;;  %v2665_v9 = vld [vmem:[#allocation2 + $0x4d4] ss:$40 sps:$4 sm:$0xff]   ;;  %v2660_v10 = vld [vmem:[#allocation2 + $0x248] ss:$40 sps:$4 sm:$0xff]  }
  0xa5   :  { %1876 = vmatprep.subr.bf16.mxu0 %v2575_v11  ;;  %v2663_v11 = vld [vmem:[#allocation2 + $0x4d0] ss:$40 sps:$4 sm:$0xff]  }
  0xa6   :  { %1663 = vmatmul.mubr.bf16.vlgmr.msra.gmra.mrb[4].mxu1 %v2890_v7 }
  0xa7   :  { %1786 = vmatmul.mubr.bf16.vlgmr.msra.gmra.mrb[4].mxu0 %v2880_v36  ;;  %1672 = vmatpush1.bf16.msra.mxu1 %v2570_v12  ;;  %v2668_v12 = vld [vmem:[#allocation2 + $0x29c] ss:$40 sps:$4 sm:$0xff]  }
  0xa8   :  { %1877 = vmatpush1.bf16.msra.mxu0 %v2573_v13  ;;  %1673 = vmatprep.subr.bf16.mxu1 %v2578_v14  ;;  %v2671_v13 = vld [vmem:[#allocation2 + $0x524] ss:$40 sps:$4 sm:$0xff]   ;;  %v2666_v14 = vld [vmem:[#allocation2 + $0x298] ss:$40 sps:$4 sm:$0xff]  }
  0xa9   :  { %1878 = vmatprep.subr.bf16.mxu0 %v2581_v15  ;;  %1703 = vmatprep.mubr.bf16.mxu1 %v2831_v0  ;;  %v2669_v15 = vld [vmem:[#allocation2 + $0x520] ss:$40 sps:$4 sm:$0xff]  }
  0xaa   :  { %1908 = vmatprep.mubr.bf16.mxu0 %v2886_v52 }
  0xab   :  { %1674 = vmatpush1.bf16.msra.mxu1 %v2576_v16  ;;  %v2674_v16 = vld [vmem:[#allocation2 + $0x2ec] ss:$40 sps:$4 sm:$0xff]  }
  0xac   :  { %1879 = vmatpush1.bf16.msra.mxu0 %v2579_v17  ;;  %1675 = vmatprep.subr.bf16.mxu1 %v2584_v18  ;;  %v2677_v17 = vld [vmem:[#allocation2 + $0x574] ss:$40 sps:$4 sm:$0xff]   ;;  %v2672_v18 = vld [vmem:[#allocation2 + $0x2e8] ss:$40 sps:$4 sm:$0xff]  }
  0xad   :  { %1880 = vmatprep.subr.bf16.mxu0 %v2587_v19  ;;  %v2675_v19 = vld [vmem:[#allocation2 + $0x570] ss:$40 sps:$4 sm:$0xff]  }
  0xaf   :  { %1676 = vmatpush1.bf16.msra.mxu1 %v2582_v20  ;;  %v2680_v20 = vld [vmem:[#allocation2 + $0x33c] ss:$40 sps:$4 sm:$0xff]  }
  0xb0   :  { %1881 = vmatpush1.bf16.msra.mxu0 %v2585_v21  ;;  %1677 = vmatprep.subr.bf16.mxu1 %v2590_v22  ;;  %v2683_v21 = vld [vmem:[#allocation2 + $0x5c4] ss:$40 sps:$4 sm:$0xff]   ;;  %v2678_v22 = vld [vmem:[#allocation2 + $0x338] ss:$40 sps:$4 sm:$0xff]  }
  0xb1   :  { %1882 = vmatprep.subr.bf16.mxu0 %v2593_v23  ;;  %v2681_v23 = vld [vmem:[#allocation2 + $0x5c0] ss:$40 sps:$4 sm:$0xff]  }
  0xb3   :  { %1678 = vmatpush1.bf16.msra.mxu1 %v2588_v24  ;;  %v2686_v24 = vld [vmem:[#allocation2 + $0x38c] ss:$40 sps:$4 sm:$0xff]  }
  0xb4   :  { %1883 = vmatpush1.bf16.msra.mxu0 %v2591_v25  ;;  %1679 = vmatprep.subr.bf16.mxu1 %v2596_v26  ;;  %v2689_v25 = vld [vmem:[#allocation2 + $0x614] ss:$40 sps:$4 sm:$0xff]   ;;  %v2684_v26 = vld [vmem:[#allocation2 + $0x388] ss:$40 sps:$4 sm:$0xff]  }
  0xb5   :  { %1884 = vmatprep.subr.bf16.mxu0 %v2599_v27  ;;  %v2687_v27 = vld [vmem:[#allocation2 + $0x610] ss:$40 sps:$4 sm:$0xff]  }
  0xb7   :  { %1680 = vmatpush1.bf16.msra.mxu1 %v2594_v28  ;;  %v2692_v28 = vld [vmem:[#allocation2 + $0x3dc] ss:$40 sps:$4 sm:$0xff]  }
  0xb8   :  { %1885 = vmatpush1.bf16.msra.mxu0 %v2597_v29  ;;  %1681 = vmatprep.subr.bf16.mxu1 %v2602_v30  ;;  %v2695_v29 = vld [vmem:[#allocation2 + $0x664] ss:$40 sps:$4 sm:$0xff]   ;;  %v2690_v30 = vld [vmem:[#allocation2 + $0x3d8] ss:$40 sps:$4 sm:$0xff]  }
  0xb9   :  { %1886 = vmatprep.subr.bf16.mxu0 %v2605_v31  ;;  %v2693_v31 = vld [vmem:[#allocation2 + $0x660] ss:$40 sps:$4 sm:$0xff]  }
  0xbb   :  { %1682 = vmatpush1.bf16.msra.mxu1 %v2600_v32  ;;  %v2698_v32 = vld [vmem:[#allocation2 + $0x42c] ss:$40 sps:$4 sm:$0xff]  }
  0xbc   :  { %1887 = vmatpush1.bf16.msra.mxu0 %v2603_v33  ;;  %1683 = vmatprep.subr.bf16.mxu1 %v2608_v34  ;;  %v2701_v33 = vld [vmem:[#allocation2 + $0x6b4] ss:$40 sps:$4 sm:$0xff]   ;;  %v2696_v34 = vld [vmem:[#allocation2 + $0x428] ss:$40 sps:$4 sm:$0xff]  }
  0xbd   :  { %1888 = vmatprep.subr.bf16.mxu0 %v2611_v35  ;;  %v2699_v35 = vld [vmem:[#allocation2 + $0x6b0] ss:$40 sps:$4 sm:$0xff]  }
  0xbf   :  { %1684 = vmatpush1.bf16.msra.mxu1 %v2606_v37  ;;  %v2704_v37 = vld [vmem:[#allocation2 + $0x47c] ss:$40 sps:$4 sm:$0xff]  }
  0xc0   :  { %1889 = vmatpush1.bf16.msra.mxu0 %v2609_v38  ;;  %1685 = vmatprep.subr.bf16.mxu1 %v2614_v39  ;;  %v2707_v38 = vld [vmem:[#allocation2 + $0x704] ss:$40 sps:$4 sm:$0xff]   ;;  %v2702_v39 = vld [vmem:[#allocation2 + $0x478] ss:$40 sps:$4 sm:$0xff]  }
  0xc1   :  { %1890 = vmatprep.subr.bf16.mxu0 %v2617_v40  ;;  %v2705_v40 = vld [vmem:[#allocation2 + $0x700] ss:$40 sps:$4 sm:$0xff]  }
  0xc3   :  { %1686 = vmatpush1.bf16.msra.mxu1 %v2612_v41  ;;  %v2710_v41 = vld [vmem:[#allocation2 + $0x4cc] ss:$40 sps:$4 sm:$0xff]  }
  0xc4   :  { %1891 = vmatpush1.bf16.msra.mxu0 %v2615_v42  ;;  %1794 = vmatprep.subr.bf16.mxu1 %v2620_v43  ;;  %v2713_v42 = vld [vmem:[#allocation2 + $0x754] ss:$40 sps:$4 sm:$0xff]   ;;  %v2708_v43 = vld [vmem:[#allocation2 + $0x4c8] ss:$40 sps:$4 sm:$0xff]  }
  0xc5   :  { %1892 = vmatprep.subr.bf16.mxu0 %v2623_v44  ;;  %v2711_v44 = vld [vmem:[#allocation2 + $0x750] ss:$40 sps:$4 sm:$0xff]  }
  0xc6   :  { %1704 = vmatmul.mubr.bf16.vlgmr.msra.gmra.mrb[4].mxu1 %v2880_v36  ;;  %v2636_v36 = vld [vmem:[#allocation2 + $0x108] ss:$40 sps:$4 sm:$0xff]  }
  0xc7   :  { %1795 = vmatpush1.bf16.msra.mxu1 %v2618_v45  ;;  %1826 = vmatprep.mubr.bf16.mxu1 %v2886_v52  ;;  %v2645_v52 = vld [vmem:[#allocation2 + $0x3e0] ss:$40 sps:$4 sm:$0xff]   ;;  %v2716_v45 = vld [vmem:[#allocation2 + $0x51c] ss:$40 sps:$4 sm:$0xff]  }
  0xc8   :  { %1893 = vmatpush1.bf16.msra.mxu0 %v2621_v46  ;;  %1796 = vmatprep.subr.bf16.mxu1 %v2626_v47  ;;  %v2714_v46 = vld [vmem:[#allocation2 + $0x518] ss:$40 sps:$4 sm:$0xff]   ;;  %v2719_v47 = vld [vmem:[#allocation2 + $0x56c] ss:$40 sps:$4 sm:$0xff]  }
  0xc9   :  { %1894 = vmatprep.subr.bf16.mxu0 %v2629_v48  ;;  %v2778_v48 = vld [vmem:[%s2952_s0 + $0x8] ss:$0 sps:$4 sm:$0xff]  }
  0xcb   :  { %1797 = vmatpush1.bf16.msra.mxu1 %v2624_v49  ;;  %v2717_v49 = vld [vmem:[#allocation2 + $0x568] ss:$40 sps:$4 sm:$0xff]  }
  0xcc   :  { %1895 = vmatpush1.bf16.msra.mxu0 %v2627_v50  ;;  %1798 = vmatprep.subr.bf16.mxu1 %v2632_v51  ;;  %v2722_v50 = vld [vmem:[#allocation2 + $0x5bc] ss:$40 sps:$4 sm:$0xff]   ;;  %v2720_v51 = vld [vmem:[#allocation2 + $0x5b8] ss:$40 sps:$4 sm:$0xff]  }
  0xcd   :  { %1896 = vmatprep.subr.bf16.mxu0 %v2635_v53  ;;  %v2725_v53 = vld [vmem:[#allocation2 + $0x60c] ss:$40 sps:$4 sm:$0xff]  }
  0xcf   :  { %1799 = vmatpush1.bf16.msra.mxu1 %v2630_v54  ;;  %v2723_v54 = vld [vmem:[#allocation2 + $0x608] ss:$40 sps:$4 sm:$0xff]  }
  0xd0   :  { %1897 = vmatpush1.bf16.msra.mxu0 %v2633_v55  ;;  %1800 = vmatprep.subr.bf16.mxu1 %v2638_v56  ;;  %v2728_v55 = vld [vmem:[#allocation2 + $0x65c] ss:$40 sps:$4 sm:$0xff]   ;;  %v2726_v56 = vld [vmem:[#allocation2 + $0x658] ss:$40 sps:$4 sm:$0xff]  }
  0xd1   :  { %1898 = vmatprep.subr.bf16.mxu0 %v2641_v57  ;;  %v2731_v57 = vld [vmem:[#allocation2 + $0x6ac] ss:$40 sps:$4 sm:$0xff]  }
  0xd3   :  { %1801 = vmatpush1.bf16.msra.mxu1 %v2636_v36  ;;  %v2734_v36 = vld [vmem:[#allocation2 + $0x6fc] ss:$40 sps:$4 sm:$0xff]  }
  0xd4   :  { %1899 = vmatpush1.bf16.msra.mxu0 %v2639_v58  ;;  %1802 = vmatprep.subr.bf16.mxu1 %v2644_v59  ;;  %v2732_v59 = vld [vmem:[#allocation2 + $0x6f8] ss:$40 sps:$4 sm:$0xff]  }
  0xd5   :  { %1900 = vmatprep.subr.bf16.mxu0 %v2647_v60 }
  0xd7   :  { %1803 = vmatpush1.bf16.msra.mxu1 %v2642_v61  ;;  %v2737_v61 = vld [vmem:[#allocation2 + $0x74c] ss:$40 sps:$4 sm:$0xff]  }
  0xd8   :  { %1901 = vmatpush1.bf16.msra.mxu0 %v2645_v52  ;;  %1804 = vmatprep.subr.bf16.mxu1 %v2650_v62  ;;  %v2735_v62 = vld [vmem:[#allocation2 + $0x748] ss:$40 sps:$4 sm:$0xff]  }
  0xd9   :  { %1902 = vmatprep.subr.bf16.mxu0 %v2653_v63  ;;  %v287_v63 = vlaneseq }
  0xdb   :  { %1805 = vmatpush1.bf16.msra.mxu1 %v2648_v1  ;;  %v2909_v1 = vshrl.u32 %v287_v63, 7 }
  0xdc   :  { %1903 = vmatpush1.bf16.msra.mxu0 %v2651_v2  ;;  %1806 = vmatprep.subr.bf16.mxu1 %v2656_v3  ;;  %v2912_v3 = vld [vmem:[#allocation4] sm:$0xff] }
  0xdd   :  { %1904 = vmatprep.subr.bf16.mxu0 %v2659_v4  ;;  %v289_v2 = vsub.s32 0, %v2909_v1  ;;  %v293_v4 = vsub.s32 1, %v2909_v1 }
  0xdf   :  { %1807 = vmatpush1.bf16.msra.mxu1 %v2654_v5  ;;  %v290_v5 = vrot.slane %v2912_v3, %v289_v2 }
  0xe0   :  { %1905 = vmatpush1.bf16.msra.mxu0 %v2657_v6  ;;  %1808 = vmatprep.subr.bf16.mxu1 %v2662_v8  ;;  %v294_v6 = vrot.slane %v2912_v3, %v293_v4 }
  0xe1   :  { %1906 = vmatprep.subr.bf16.mxu0 %v2665_v9 }
  0xe3   :  { %1809 = vmatpush1.bf16.msra.mxu1 %v2660_v10 }
  0xe4   :  { %1907 = vmatpush1.bf16.msra.mxu0 %v2663_v11  ;;  %1810 = vmatprep.subr.bf16.mxu1 %v2668_v12 }
  0xe5   :  { %1917 = vmatprep.subr.bf16.mxu0 %v2671_v13 }
  0xe7   :  { %1909 = vmatmul.mubr.bf16.vlgmr.msra.gmra.mrb[8].mxu0 %v2890_v7  ;;  %1811 = vmatpush1.bf16.msra.mxu1 %v2666_v14 }
  0xe8   :  { %1918 = vmatpush1.bf16.msra.mxu0 %v2669_v15  ;;  %1812 = vmatprep.subr.bf16.mxu1 %v2674_v16 }
  0xe9   :  { %1919 = vmatprep.subr.bf16.mxu0 %v2677_v17  ;;  %1949 = vmatprep.mubr.bf16.mxu0 %v2831_v0 }
  0xeb   :  { %1813 = vmatpush1.bf16.msra.mxu1 %v2672_v18 }
  0xec   :  { %1920 = vmatpush1.bf16.msra.mxu0 %v2675_v19  ;;  %1814 = vmatprep.subr.bf16.mxu1 %v2680_v20 }
  0xed   :  { %1921 = vmatprep.subr.bf16.mxu0 %v2683_v21 }
  0xef   :  { %1815 = vmatpush1.bf16.msra.mxu1 %v2678_v22 }
  0xf0   :  { %1922 = vmatpush1.bf16.msra.mxu0 %v2681_v23  ;;  %1816 = vmatprep.subr.bf16.mxu1 %v2686_v24 }
  0xf1   :  { %1923 = vmatprep.subr.bf16.mxu0 %v2689_v25 }
  0xf3   :  { %1817 = vmatpush1.bf16.msra.mxu1 %v2684_v26 }
  0xf4   :  { %1924 = vmatpush1.bf16.msra.mxu0 %v2687_v27  ;;  %1818 = vmatprep.subr.bf16.mxu1 %v2692_v28  ;;  %v305_v27 = vsub.s32 4, %v2909_v1  ;;  %v309_v28 = vsub.s32 5, %v2909_v1 }
  0xf5   :  { %1925 = vmatprep.subr.bf16.mxu0 %v2695_v29 }
  0xf6   :  { %v306_v29 = vrot.slane %v2912_v3, %v305_v27 }
  0xf7   :  { %1819 = vmatpush1.bf16.msra.mxu1 %v2690_v30  ;;  %v310_v30 = vrot.slane %v2912_v3, %v309_v28 }
  0xf8   :  { %1926 = vmatpush1.bf16.msra.mxu0 %v2693_v31  ;;  %1820 = vmatprep.subr.bf16.mxu1 %v2698_v32 }
  0xf9   :  { %1927 = vmatprep.subr.bf16.mxu0 %v2701_v33 }
  0xfb   :  { %1821 = vmatpush1.bf16.msra.mxu1 %v2696_v34 }
  0xfc   :  { %1928 = vmatpush1.bf16.msra.mxu0 %v2699_v35  ;;  %1822 = vmatprep.subr.bf16.mxu1 %v2704_v37 }
  0xfd   :  { %1929 = vmatprep.subr.bf16.mxu0 %v2707_v38 }
  0xff   :  { %1823 = vmatpush1.bf16.msra.mxu1 %v2702_v39 }
 0x100   :  { %1930 = vmatpush1.bf16.msra.mxu0 %v2705_v40  ;;  %1824 = vmatprep.subr.bf16.mxu1 %v2710_v41 }
 0x101   :  { %1931 = vmatprep.subr.bf16.mxu0 %v2713_v42 }
 0x103   :  { %1825 = vmatpush1.bf16.msra.mxu1 %v2708_v43 }
 0x104   :  { %1932 = vmatpush1.bf16.msra.mxu0 %v2711_v44  ;;  %1835 = vmatprep.subr.bf16.mxu1 %v2716_v45  ;;  %v297_v44 = vsub.s32 2, %v2909_v1  ;;  %v301_v45 = vsub.s32 3, %v2909_v1 }
 0x106   :  { %1827 = vmatmul.mubr.bf16.vlgmr.msra.gmra.mrb[8].mxu1 %v2890_v7  ;;  %v2729_v7 = vld [vmem:[#allocation2 + $0x6a8] ss:$40 sps:$4 sm:$0xff]  }
 0x107   :  { %1950 = vmatmul.mubr.bf16.vlgmr.msra.gmra.mrb[8].mxu0 %v2778_v48  ;;  %1836 = vmatpush1.bf16.msra.mxu1 %v2714_v46 }
 0x108   :  { %1867 = vmatprep.mubr.bf16.mxu1 %v2831_v0  ;;  %1837 = vmatprep.subr.bf16.mxu1 %v2719_v47 }
 0x10b   :  { %1838 = vmatpush1.bf16.msra.mxu1 %v2717_v49  ;;  %v298_v49 = vrot.slane %v2912_v3, %v297_v44 }
 0x10c   :  { %1839 = vmatprep.subr.bf16.mxu1 %v2722_v50 }
 0x10f   :  { %1840 = vmatpush1.bf16.msra.mxu1 %v2720_v51  ;;  %v302_v51 = vrot.slane %v2912_v3, %v301_v45 }
 0x110   :  { %1841 = vmatprep.subr.bf16.mxu1 %v2725_v53 }
 0x113   :  { %1842 = vmatpush1.bf16.msra.mxu1 %v2723_v54 }
 0x114   :  { %1843 = vmatprep.subr.bf16.mxu1 %v2728_v55 }
 0x117   :  { %1844 = vmatpush1.bf16.msra.mxu1 %v2726_v56 }
 0x118   :  { %1845 = vmatprep.subr.bf16.mxu1 %v2731_v57 }
 0x11a   :  { %v1623_v58 = vpop.f32.mrb[0].mxu0 }
 0x11b   :  { %v1625_v0 = vpop.f32.mrb[1].mxu0  ;;  %1846 = vmatpush1.bf16.msra.mxu1 %v2729_v7 }
 0x11c   :  { %v1627_v60 = vpop.f32.mrb[2].mxu0  ;;  %1847 = vmatprep.subr.bf16.mxu1 %v2734_v36 }
 0x11d   :  { %v1628_v52 = vpop.f32.mrb[3].mxu0 }
 0x11f   :  { %1848 = vmatpush1.bf16.msra.mxu1 %v2732_v59 }
 0x120   :  { %1849 = vmatprep.subr.bf16.mxu1 %v2737_v61 }
 0x123   :  { %1850 = vmatpush1.bf16.msra.mxu1 %v2735_v62 }
 0x126   :  { %1868 = vmatmul.mubr.bf16.vlgmr.msra.gmra.mrb[8].mxu1 %v2778_v48 }
 0x139   :  { %v1582_v8 = vpop.f32.mrb[0].mxu1 }
 0x13a   :  { %v1583_v9 = vadd.f32 %v1582_v8, %v290_v5  ;;  %v1584_v10 = vpop.f32.mrb[1].mxu1 }
 0x13b   :  { %v1585_v11 = vadd.f32 %v1584_v10, %v294_v6  ;;  %v1586_v12 = vpop.f32.mrb[2].mxu1 }
 0x13c   :  { %v1624_v13 = vadd.f32 %v1623_v58, %v1583_v9  ;;  %v1587_v14 = vpop.f32.mrb[3].mxu1  ;;  %v284_v9 = vld [vmem:[#allocation4 + $0x8] sm:$0x3] }
 0x13d   :  { %v1626_v15 = vadd.f32 %v1625_v0, %v1585_v11  ;;  %v322_v10 = vrot.slane %v284_v9, %v289_v2  ;;  %v326_v11 = vrot.slane %v284_v9, %v293_v4  ;;  %v313_v2 = vsub.s32 6, %v2909_v1 }
 0x13e   :  { %v2322_v16 = vmul.f32 -1.442695, %v1624_v13  ;;  %v317_v4 = vsub.s32 7, %v2909_v1 }
 0x13f   :  { %v2323_v17 = vmul.f32 -1.442695, %v1626_v15  ;;  %v314_v27 = vrot.slane %v2912_v3, %v313_v2 }
 0x140   :  { %2738 = vpow2.f32 %v2322_v16 }
 0x141   :  { %2740 = vpow2.f32 %v2323_v17 }
 0x14a   :  { %v2739_v18 = vpop.eup %2738 }
 0x14b   :  { %v2741_v19 = vpop.eup %2740  ;;  %v1988_v20 = vadd.f32 1.0, %v2739_v18 }
 0x14c   :  { %v1989_v21 = vadd.f32 1.0, %v2741_v19 }
 0x14d   :  { %2742 = vrcp.f32 %v1988_v20 }
 0x14e   :  { %2744 = vrcp.f32 %v1989_v21 }
 0x157   :  { %v2743_v22 = vpop.eup %2742 }
 0x158   :  { %v2745_v23 = vpop.eup %2744  ;;  %v2018_v24 = vmul.f32 %v2743_v22, %v1624_v13 }
 0x159   :  { %v2019_v25 = vmul.f32 %v2745_v23, %v1626_v15 }
 0x15b   :  { %v2337_v26 = vpack.c.bf16 %v2019_v25, %v2018_v24 }
 0x15d   :  { %2068 = vst [vmem:[%s2955_s3] sm:$0xff] %v2337_v26 }
 0x17a   :  { %v1787_v31 = vpop.f32.mrb[4].mxu0 }
 0x17b   :  { %v2348_v32 = vadd.f32 %v1787_v31, %v306_v29  ;;  %v1789_v33 = vpop.f32.mrb[5].mxu0  ;;  %v318_v29 = vrot.slane %v2912_v3, %v317_v4 }
 0x17c   :  { %v2349_v34 = vadd.f32 %v1789_v33, %v310_v30  ;;  %v1791_v35 = vpop.f32.mrb[6].mxu0 }
 0x17d   :  { %v2326_v37 = vmul.f32 -1.442695, %v2348_v32  ;;  %v1792_v38 = vpop.f32.mrb[7].mxu0 }
 0x17e   :  { %v2327_v39 = vmul.f32 -1.442695, %v2349_v34 }
 0x17f   :  { %2746 = vpow2.f32 %v2326_v37 }
 0x180   :  { %2748 = vpow2.f32 %v2327_v39 }
 0x189   :  { %v2747_v40 = vpop.eup %2746 }
 0x18a   :  { %v2749_v41 = vpop.eup %2748  ;;  %v1992_v42 = vadd.f32 1.0, %v2747_v40 }
 0x18b   :  { %v1993_v43 = vadd.f32 1.0, %v2749_v41 }
 0x18c   :  { %2750 = vrcp.f32 %v1992_v42 }
 0x18d   :  { %2752 = vrcp.f32 %v1993_v43 }
 0x196   :  { %v2751_v46 = vpop.eup %2750 }
 0x197   :  { %v2753_v47 = vpop.eup %2752  ;;  %v2022_v48 = vmul.f32 %v2751_v46, %v2348_v32 }
 0x198   :  { %v2023_v50 = vmul.f32 %v2753_v47, %v2349_v34 }
 0x199   :  { %v1705_v54 = vpop.f32.mrb[4].mxu1 }
 0x19a   :  { %v2339_v53 = vpack.c.bf16 %v2023_v50, %v2022_v48  ;;  %v2346_v55 = vadd.f32 %v1705_v54, %v298_v49  ;;  %v1707_v56 = vpop.f32.mrb[5].mxu1 }
 0x19b   :  { %v2347_v57 = vadd.f32 %v1707_v56, %v302_v51  ;;  %v1709_v7 = vpop.f32.mrb[6].mxu1 }
 0x19c   :  { %2070 = vst [vmem:[%s2955_s3 + $0x10] sm:$0xff] %v2339_v53  ;;  %v2324_v36 = vmul.f32 -1.442695, %v2346_v55  ;;  %v1710_v58 = vpop.f32.mrb[7].mxu1 }
 0x19d   :  { %v2325_v0 = vmul.f32 -1.442695, %v2347_v57 }
 0x19e   :  { %2754 = vpow2.f32 %v2324_v36 }
 0x19f   :  { %2756 = vpow2.f32 %v2325_v0 }
 0x1a8   :  { %v2755_v59 = vpop.eup %2754 }
 0x1a9   :  { %v2757_v60 = vpop.eup %2756  ;;  %v1990_v61 = vadd.f32 1.0, %v2755_v59 }
 0x1aa   :  { %v1991_v52 = vadd.f32 1.0, %v2757_v60 }
 0x1ab   :  { %2758 = vrcp.f32 %v1990_v61 }
 0x1ac   :  { %2760 = vrcp.f32 %v1991_v52 }
 0x1b5   :  { %v2759_v62 = vpop.eup %2758 }
 0x1b6   :  { %v2761_v63 = vpop.eup %2760  ;;  %v2020_v5 = vmul.f32 %v2759_v62, %v2346_v55 }
 0x1b7   :  { %v2021_v6 = vmul.f32 %v2761_v63, %v2347_v57 }
 0x1b9   :  { %v2338_v8 = vpack.c.bf16 %v2021_v6, %v2020_v5 }
 0x1bb   :  { %2069 = vst [vmem:[%s2955_s3 + $0x8] sm:$0xff] %v2338_v8 }
 0x1da   :  { %v1951_v12 = vpop.f32.mrb[8].mxu0 }
 0x1db   :  { %v2352_v13 = vadd.f32 %v1951_v12, %v322_v10  ;;  %v1953_v14 = vpop.f32.mrb[9].mxu0 }
 0x1dc   :  { %v2353_v15 = vadd.f32 %v1953_v14, %v326_v11  ;;  %v1955_v16 = vpop.f32.mrb[10].mxu0 }
 0x1dd   :  { %v2330_v17 = vmul.f32 -1.442695, %v2352_v13  ;;  %v1956_v18 = vpop.f32.mrb[11].mxu0 }
 0x1de   :  { %v2331_v19 = vmul.f32 -1.442695, %v2353_v15 }
 0x1df   :  { %2762 = vpow2.f32 %v2330_v17 }
 0x1e0   :  { %2764 = vpow2.f32 %v2331_v19 }
 0x1e9   :  { %v2763_v20 = vpop.eup %2762 }
 0x1ea   :  { %v2765_v21 = vpop.eup %2764  ;;  %v1996_v22 = vadd.f32 1.0, %v2763_v20 }
 0x1eb   :  { %v1997_v23 = vadd.f32 1.0, %v2765_v21 }
 0x1ec   :  { %2766 = vrcp.f32 %v1996_v22 }
 0x1ed   :  { %2768 = vrcp.f32 %v1997_v23 }
 0x1f6   :  { %v2767_v24 = vpop.eup %2766 }
 0x1f7   :  { %v2769_v25 = vpop.eup %2768  ;;  %v2026_v26 = vmul.f32 %v2767_v24, %v2352_v13 }
 0x1f8   :  { %v2027_v28 = vmul.f32 %v2769_v25, %v2353_v15 }
 0x1f9   :  { %v1869_v31 = vpop.f32.mrb[8].mxu1 }
 0x1fa   :  { %v2341_v30 = vpack.c.bf16 %v2027_v28, %v2026_v26  ;;  %v2350_v32 = vadd.f32 %v1869_v31, %v314_v27  ;;  %v1871_v33 = vpop.f32.mrb[9].mxu1 }
 0x1fb   :  { %v2351_v34 = vadd.f32 %v1871_v33, %v318_v29  ;;  %v1873_v35 = vpop.f32.mrb[10].mxu1 }
 0x1fc   :  { %2072 = vst [vmem:[%s2955_s3 + $0x20] sm:$0xff] %v2341_v30  ;;  %v2328_v37 = vmul.f32 -1.442695, %v2350_v32  ;;  %v1874_v1 = vpop.f32.mrb[11].mxu1 }
 0x1fd   :  { %v2329_v38 = vmul.f32 -1.442695, %v2351_v34 }
 0x1fe   :  { %2770 = vpow2.f32 %v2328_v37 }
 0x1ff   :  { %2772 = vpow2.f32 %v2329_v38 }
 0x208   :  { %v2771_v39 = vpop.eup %2770 }
 0x209   :  { %v2773_v40 = vpop.eup %2772  ;;  %v1994_v41 = vadd.f32 1.0, %v2771_v39 }
 0x20a   :  { %v1995_v42 = vadd.f32 1.0, %v2773_v40 }
 0x20b   :  { %2774 = vrcp.f32 %v1994_v41 }
 0x20c   :  { %2776 = vrcp.f32 %v1995_v42 }
 0x215   :  { %v2775_v3 = vpop.eup %2774 }
 0x216   :  { %v2777_v43 = vpop.eup %2776  ;;  %v2024_v44 = vmul.f32 %v2775_v3, %v2350_v32 }
 0x217   :  { %v2025_v45 = vmul.f32 %v2777_v43, %v2351_v34 }
 0x219   :  { %v2340_v46 = vpack.c.bf16 %v2025_v45, %v2024_v44 }
 0x21b   :  { %2071 = vst [vmem:[%s2955_s3 + $0x18] sm:$0xff] %v2340_v46 }
 0x21c   :  { %2077 = vsyncpa [#allocation3], 1 }
 0x21d   :  { %2078 = vsyncpa [#allocation5], 1 }

// kernel: time_embedding_forward.3
= control target key start
LH: loop header
LB: loop body
LE: loop exit
PB: predicated region body
PF: predicated region fallthrough
CT: control target
= control target key end

     0   :  { %s3612_s1 = inlined_call_operand.vmem [shape: bf16[1280,384], index: 1, kind: input, shape index: {}]   ;;  %s3613_s0 = inlined_call_operand.vmem [shape: bf16[8,1280], index: 0, kind: input, shape index: {}]   ;;  %s3614_s2 = inlined_call_operand.vmem [shape: f32[1,384], index: 2, kind: input, shape index: {}]   ;;  %s3615_s3 = inlined_call_operand.vmem [shape: bf16[8,384], index: 3, kind: output, shape index: {}]  }
   0x1   :  { %v2476_v0 = vld [vmem:[%s3612_s1 + $0x4] ss:$12 sps:$4 sm:$0xff]   ;;  %v2480_v2 = vld [vmem:[%s3612_s1] ss:$12 sps:$4 sm:$0xff]   ;;  %v2482_v4 = vld [vmem:[%s3612_s1 + $0x1c] ss:$12 sps:$4 sm:$0xff]  }
   0x2   :  { %v2478_v1 = vld [vmem:[%s3612_s1 + $0x184] ss:$12 sps:$4 sm:$0xff]   ;;  %1672 = vmatprep.subr.bf16.mxu1 %v2476_v0  ;;  %v2481_v3 = vld [vmem:[%s3612_s1 + $0x180] ss:$12 sps:$4 sm:$0xff]   ;;  %v2484_v5 = vld [vmem:[%s3612_s1 + $0x19c] ss:$12 sps:$4 sm:$0xff]  }
   0x3   :  { %1713 = vmatprep.subr.bf16.mxu0 %v2478_v1  ;;  %1673 = vmatpush1.bf16.msra.mxu1 %v2480_v2  ;;  %v2486_v6 = vld [vmem:[%s3612_s1 + $0x18] ss:$12 sps:$4 sm:$0xff]   ;;  %v2488_v8 = vld [vmem:[%s3612_s1 + $0x34] ss:$12 sps:$4 sm:$0xff]   ;;  %v2492_v10 = vld [vmem:[%s3612_s1 + $0x30] ss:$12 sps:$4 sm:$0xff]  }
   0x4   :  { %1714 = vmatpush1.bf16.msra.mxu0 %v2481_v3  ;;  %1674 = vmatprep.subr.bf16.mxu1 %v2482_v4  ;;  %v2487_v7 = vld [vmem:[%s3612_s1 + $0x198] ss:$12 sps:$4 sm:$0xff]   ;;  %v2490_v9 = vld [vmem:[%s3612_s1 + $0x1b4] ss:$12 sps:$4 sm:$0xff]   ;;  %v2493_v11 = vld [vmem:[%s3612_s1 + $0x1b0] ss:$12 sps:$4 sm:$0xff]  }
   0x5   :  { %1715 = vmatprep.subr.bf16.mxu0 %v2484_v5  ;;  %v2494_v12 = vld [vmem:[%s3612_s1 + $0x4c] ss:$12 sps:$4 sm:$0xff]   ;;  %v2498_v14 = vld [vmem:[%s3612_s1 + $0x48] ss:$12 sps:$4 sm:$0xff]   ;;  %v2500_v16 = vld [vmem:[%s3612_s1 + $0x64] ss:$12 sps:$4 sm:$0xff]  }
   0x6   :  { %v2496_v13 = vld [vmem:[%s3612_s1 + $0x1cc] ss:$12 sps:$4 sm:$0xff]   ;;  %v2499_v15 = vld [vmem:[%s3612_s1 + $0x1c8] ss:$12 sps:$4 sm:$0xff]   ;;  %v2502_v17 = vld [vmem:[%s3612_s1 + $0x1e4] ss:$12 sps:$4 sm:$0xff]  }
   0x7   :  { %1675 = vmatpush1.bf16.msra.mxu1 %v2486_v6  ;;  %v2504_v18 = vld [vmem:[%s3612_s1 + $0x60] ss:$12 sps:$4 sm:$0xff]   ;;  %v2506_v20 = vld [vmem:[%s3612_s1 + $0x7c] ss:$12 sps:$4 sm:$0xff]   ;;  %v2510_v22 = vld [vmem:[%s3612_s1 + $0x78] ss:$12 sps:$4 sm:$0xff]  }
   0x8   :  { %1716 = vmatpush1.bf16.msra.mxu0 %v2487_v7  ;;  %1676 = vmatprep.subr.bf16.mxu1 %v2488_v8  ;;  %v2505_v19 = vld [vmem:[%s3612_s1 + $0x1e0] ss:$12 sps:$4 sm:$0xff]   ;;  %v2508_v21 = vld [vmem:[%s3612_s1 + $0x1fc] ss:$12 sps:$4 sm:$0xff]   ;;  %v2511_v23 = vld [vmem:[%s3612_s1 + $0x1f8] ss:$12 sps:$4 sm:$0xff]  }
   0x9   :  { %1717 = vmatprep.subr.bf16.mxu0 %v2490_v9  ;;  %v2512_v24 = vld [vmem:[%s3612_s1 + $0x94] ss:$12 sps:$4 sm:$0xff]   ;;  %v2516_v26 = vld [vmem:[%s3612_s1 + $0x90] ss:$12 sps:$4 sm:$0xff]   ;;  %v2518_v28 = vld [vmem:[%s3612_s1 + $0xac] ss:$12 sps:$4 sm:$0xff]  }
   0xa   :  { %v2514_v25 = vld [vmem:[%s3612_s1 + $0x214] ss:$12 sps:$4 sm:$0xff]   ;;  %v2517_v27 = vld [vmem:[%s3612_s1 + $0x210] ss:$12 sps:$4 sm:$0xff]   ;;  %v2520_v29 = vld [vmem:[%s3612_s1 + $0x22c] ss:$12 sps:$4 sm:$0xff]  }
   0xb   :  { %1677 = vmatpush1.bf16.msra.mxu1 %v2492_v10  ;;  %v2522_v30 = vld [vmem:[%s3612_s1 + $0xa8] ss:$12 sps:$4 sm:$0xff]   ;;  %v2524_v32 = vld [vmem:[%s3612_s1 + $0xc4] ss:$12 sps:$4 sm:$0xff]   ;;  %v2528_v34 = vld [vmem:[%s3612_s1 + $0xc0] ss:$12 sps:$4 sm:$0xff]  }
   0xc   :  { %1718 = vmatpush1.bf16.msra.mxu0 %v2493_v11  ;;  %1678 = vmatprep.subr.bf16.mxu1 %v2494_v12  ;;  %v2523_v31 = vld [vmem:[%s3612_s1 + $0x228] ss:$12 sps:$4 sm:$0xff]   ;;  %v2526_v33 = vld [vmem:[%s3612_s1 + $0x244] ss:$12 sps:$4 sm:$0xff]   ;;  %v2529_v35 = vld [vmem:[%s3612_s1 + $0x240] ss:$12 sps:$4 sm:$0xff]  }
   0xd   :  { %1719 = vmatprep.subr.bf16.mxu0 %v2496_v13  ;;  %v2530_v36 = vld [vmem:[%s3612_s1 + $0xdc] ss:$12 sps:$4 sm:$0xff]   ;;  %v2534_v38 = vld [vmem:[%s3612_s1 + $0xd8] ss:$12 sps:$4 sm:$0xff]   ;;  %v2536_v40 = vld [vmem:[%s3612_s1 + $0xf4] ss:$12 sps:$4 sm:$0xff]  }
   0xe   :  { %v2532_v37 = vld [vmem:[%s3612_s1 + $0x25c] ss:$12 sps:$4 sm:$0xff]   ;;  %v2535_v39 = vld [vmem:[%s3612_s1 + $0x258] ss:$12 sps:$4 sm:$0xff]   ;;  %v2538_v41 = vld [vmem:[%s3612_s1 + $0x274] ss:$12 sps:$4 sm:$0xff]  }
   0xf   :  { %1679 = vmatpush1.bf16.msra.mxu1 %v2498_v14  ;;  %v2540_v42 = vld [vmem:[%s3612_s1 + $0xf0] ss:$12 sps:$4 sm:$0xff]   ;;  %v2542_v44 = vld [vmem:[%s3612_s1 + $0x10c] ss:$12 sps:$4 sm:$0xff]   ;;  %v2546_v46 = vld [vmem:[%s3612_s1 + $0x108] ss:$12 sps:$4 sm:$0xff]  }
  0x10   :  { %1720 = vmatpush1.bf16.msra.mxu0 %v2499_v15  ;;  %1680 = vmatprep.subr.bf16.mxu1 %v2500_v16  ;;  %v2541_v43 = vld [vmem:[%s3612_s1 + $0x270] ss:$12 sps:$4 sm:$0xff]   ;;  %v2544_v45 = vld [vmem:[%s3612_s1 + $0x28c] ss:$12 sps:$4 sm:$0xff]   ;;  %v15_v47 = vld [vmem:[%s3613_s0] sm:$0xff] }
  0x11   :  { %1721 = vmatprep.subr.bf16.mxu0 %v2502_v17  ;;  %v2970_v48 = vcombine.high %v15_v47, %v15_v47  ;;  %v16_v49 = vld [vmem:[%s3613_s0 + $0x8] sm:$0xff]  ;;  %v2548_v51 = vld [vmem:[%s3612_s1 + $0x124] ss:$12 sps:$4 sm:$0xff]   ;;  %v2560_v60 = vld [vmem:[%s3612_s1 + $0x154] ss:$12 sps:$4 sm:$0xff]   ;;  %v3036_v6 = vcombine.low %v15_v47, %v15_v47 }
  0x12   :  { %v2547_v50 = vld [vmem:[%s3612_s1 + $0x288] ss:$12 sps:$4 sm:$0xff]   ;;  %v2981_v52 = vcombine.high %v16_v49, %v16_v49  ;;  %v2550_v53 = vld [vmem:[%s3612_s1 + $0x2a4] ss:$12 sps:$4 sm:$0xff]   ;;  %v2552_v54 = vld [vmem:[%s3612_s1 + $0x120] ss:$12 sps:$4 sm:$0xff]   ;;  %v3038_v7 = vcombine.low %v16_v49, %v16_v49 }
  0x13   :  { %1681 = vmatpush1.bf16.msra.mxu1 %v2504_v18  ;;  %1704 = vmatprep.mubr.bf16.mxu1 %v2970_v48  ;;  %v2553_v55 = vld [vmem:[%s3612_s1 + $0x2a0] ss:$12 sps:$4 sm:$0xff]   ;;  %v2554_v56 = vld [vmem:[%s3612_s1 + $0x13c] ss:$12 sps:$4 sm:$0xff]   ;;  %v2558_v58 = vld [vmem:[%s3612_s1 + $0x138] ss:$12 sps:$4 sm:$0xff]  }
  0x14   :  { %1722 = vmatpush1.bf16.msra.mxu0 %v2505_v19  ;;  %1682 = vmatprep.subr.bf16.mxu1 %v2506_v20  ;;  %v2556_v57 = vld [vmem:[%s3612_s1 + $0x2bc] ss:$12 sps:$4 sm:$0xff]   ;;  %v2559_v59 = vld [vmem:[%s3612_s1 + $0x2b8] ss:$12 sps:$4 sm:$0xff]   ;;  %v2562_v61 = vld [vmem:[%s3612_s1 + $0x2d4] ss:$12 sps:$4 sm:$0xff]  }
  0x15   :  { %1723 = vmatprep.subr.bf16.mxu0 %v2508_v21  ;;  %1745 = vmatprep.mubr.bf16.mxu0 %v2981_v52  ;;  %v2564_v62 = vld [vmem:[%s3612_s1 + $0x150] ss:$12 sps:$4 sm:$0xff]   ;;  %v2566_v0 = vld [vmem:[%s3612_s1 + $0x16c] ss:$12 sps:$4 sm:$0xff]   ;;  %v2570_v2 = vld [vmem:[%s3612_s1 + $0x168] ss:$12 sps:$4 sm:$0xff]  }
  0x16   :  { %v2565_v63 = vld [vmem:[%s3612_s1 + $0x2d0] ss:$12 sps:$4 sm:$0xff]   ;;  %v2568_v1 = vld [vmem:[%s3612_s1 + $0x2ec] ss:$12 sps:$4 sm:$0xff]   ;;  %v2571_v3 = vld [vmem:[%s3612_s1 + $0x2e8] ss:$12 sps:$4 sm:$0xff]  }
  0x17   :  { %1683 = vmatpush1.bf16.msra.mxu1 %v2510_v22  ;;  %v2578_v4 = vld [vmem:[%s3612_s1 + $0x304] ss:$12 sps:$4 sm:$0xff]   ;;  %v2579_v5 = vld [vmem:[%s3612_s1 + $0xc8] ss:$12 sps:$4 sm:$0xff]   ;;  %v2576_v8 = vld [vmem:[%s3612_s1 + $0x300] ss:$12 sps:$4 sm:$0xff]  }
  0x18   :  { %1724 = vmatpush1.bf16.msra.mxu0 %v2511_v23  ;;  %1684 = vmatprep.subr.bf16.mxu1 %v2512_v24  ;;  %v2580_v9 = vld [vmem:[%s3612_s1 + $0x8] ss:$12 sps:$4 sm:$0xff]   ;;  %v2584_v11 = vld [vmem:[%s3612_s1 + $0xe0] ss:$12 sps:$4 sm:$0xff]   ;;  %v2581_v12 = vld [vmem:[%s3612_s1 + $0x318] ss:$12 sps:$4 sm:$0xff]  }
  0x19   :  { %1725 = vmatprep.subr.bf16.mxu0 %v2514_v25  ;;  %v2583_v10 = vld [vmem:[%s3612_s1 + $0x31c] ss:$12 sps:$4 sm:$0xff]   ;;  %v2585_v13 = vld [vmem:[%s3612_s1 + $0x20] ss:$12 sps:$4 sm:$0xff]   ;;  %v2589_v15 = vld [vmem:[%s3612_s1 + $0xf8] ss:$12 sps:$4 sm:$0xff]  }
  0x1a   :  { %v2588_v14 = vld [vmem:[%s3612_s1 + $0x334] ss:$12 sps:$4 sm:$0xff]   ;;  %v2586_v16 = vld [vmem:[%s3612_s1 + $0x330] ss:$12 sps:$4 sm:$0xff]   ;;  %v2590_v17 = vld [vmem:[%s3612_s1 + $0x38] ss:$12 sps:$4 sm:$0xff]  }
  0x1b   :  { %1685 = vmatpush1.bf16.msra.mxu1 %v2516_v26  ;;  %v2593_v18 = vld [vmem:[%s3612_s1 + $0x34c] ss:$12 sps:$4 sm:$0xff]   ;;  %v2594_v19 = vld [vmem:[%s3612_s1 + $0x110] ss:$12 sps:$4 sm:$0xff]   ;;  %v2591_v20 = vld [vmem:[%s3612_s1 + $0x348] ss:$12 sps:$4 sm:$0xff]  }
  0x1c   :  { %1726 = vmatpush1.bf16.msra.mxu0 %v2517_v27  ;;  %1686 = vmatprep.subr.bf16.mxu1 %v2518_v28  ;;  %v2595_v21 = vld [vmem:[%s3612_s1 + $0x50] ss:$12 sps:$4 sm:$0xff]   ;;  %v2599_v23 = vld [vmem:[%s3612_s1 + $0x128] ss:$12 sps:$4 sm:$0xff]   ;;  %v2596_v24 = vld [vmem:[%s3612_s1 + $0x360] ss:$12 sps:$4 sm:$0xff]  }
  0x1d   :  { %1727 = vmatprep.subr.bf16.mxu0 %v2520_v29  ;;  %v2598_v22 = vld [vmem:[%s3612_s1 + $0x364] ss:$12 sps:$4 sm:$0xff]   ;;  %v2600_v25 = vld [vmem:[%s3612_s1 + $0x68] ss:$12 sps:$4 sm:$0xff]   ;;  %v2604_v27 = vld [vmem:[%s3612_s1 + $0x140] ss:$12 sps:$4 sm:$0xff]  }
  0x1e   :  { %v2603_v26 = vld [vmem:[%s3612_s1 + $0x37c] ss:$12 sps:$4 sm:$0xff]   ;;  %v2601_v28 = vld [vmem:[%s3612_s1 + $0x378] ss:$12 sps:$4 sm:$0xff]   ;;  %v2605_v29 = vld [vmem:[%s3612_s1 + $0x80] ss:$12 sps:$4 sm:$0xff]  }
  0x1f   :  { %1687 = vmatpush1.bf16.msra.mxu1 %v2522_v30  ;;  %v2608_v30 = vld [vmem:[%s3612_s1 + $0x394] ss:$12 sps:$4 sm:$0xff]   ;;  %v2629_v49 = vld [vmem:[%s3612_s1 + $0x278] ss:$12 sps:$4 sm:$0xff]  }
  0x20   :  { %1728 = vmatpush1.bf16.msra.mxu0 %v2523_v31  ;;  %1688 = vmatprep.subr.bf16.mxu1 %v2524_v32  ;;  %v2609_v31 = vld [vmem:[%s3612_s1 + $0x158] ss:$12 sps:$4 sm:$0xff]   ;;  %v2606_v32 = vld [vmem:[%s3612_s1 + $0x390] ss:$12 sps:$4 sm:$0xff]   ;;  %v2625_v47 = vld [vmem:[%s3612_s1 + $0x1a0] ss:$12 sps:$4 sm:$0xff]  }
  0x21   :  { %1729 = vmatprep.subr.bf16.mxu0 %v2526_v33  ;;  %v2610_v33 = vld [vmem:[%s3612_s1 + $0x98] ss:$12 sps:$4 sm:$0xff]  }
  0x23   :  { %1689 = vmatpush1.bf16.msra.mxu1 %v2528_v34  ;;  %v2613_v34 = vld [vmem:[%s3612_s1 + $0x3ac] ss:$12 sps:$4 sm:$0xff]  }
  0x24   :  { %1730 = vmatpush1.bf16.msra.mxu0 %v2529_v35  ;;  %1690 = vmatprep.subr.bf16.mxu1 %v2530_v36  ;;  %v2614_v35 = vld [vmem:[%s3612_s1 + $0x170] ss:$12 sps:$4 sm:$0xff]   ;;  %v2611_v36 = vld [vmem:[%s3612_s1 + $0x3a8] ss:$12 sps:$4 sm:$0xff]  }
  0x25   :  { %1731 = vmatprep.subr.bf16.mxu0 %v2532_v37  ;;  %v2615_v37 = vld [vmem:[%s3612_s1 + $0xb0] ss:$12 sps:$4 sm:$0xff]  }
  0x27   :  { %1691 = vmatpush1.bf16.msra.mxu1 %v2534_v38  ;;  %v2618_v38 = vld [vmem:[%s3612_s1 + $0x3c4] ss:$12 sps:$4 sm:$0xff]  }
  0x28   :  { %1732 = vmatpush1.bf16.msra.mxu0 %v2535_v39  ;;  %1692 = vmatprep.subr.bf16.mxu1 %v2536_v40  ;;  %v2619_v39 = vld [vmem:[%s3612_s1 + $0x248] ss:$12 sps:$4 sm:$0xff]   ;;  %v2616_v40 = vld [vmem:[%s3612_s1 + $0x3c0] ss:$12 sps:$4 sm:$0xff]  }
  0x29   :  { %1733 = vmatprep.subr.bf16.mxu0 %v2538_v41  ;;  %v2620_v41 = vld [vmem:[%s3612_s1 + $0x188] ss:$12 sps:$4 sm:$0xff]  }
  0x2b   :  { %1693 = vmatpush1.bf16.msra.mxu1 %v2540_v42  ;;  %v2623_v42 = vld [vmem:[%s3612_s1 + $0x3dc] ss:$12 sps:$4 sm:$0xff]  }
  0x2c   :  { %1734 = vmatpush1.bf16.msra.mxu0 %v2541_v43  ;;  %1694 = vmatprep.subr.bf16.mxu1 %v2542_v44  ;;  %v3151_v43 = vld [vmem:[%s3613_s0 + $0x10] sm:$0xff]  ;;  %v2624_v44 = vld [vmem:[%s3612_s1 + $0x260] ss:$12 sps:$4 sm:$0xff]  }
  0x2d   :  { %1735 = vmatprep.subr.bf16.mxu0 %v2544_v45  ;;  %v3158_v45 = vcombine.high %v3151_v43, %v3151_v43 }
  0x2f   :  { %1695 = vmatpush1.bf16.msra.mxu1 %v2546_v46  ;;  %v2621_v46 = vld [vmem:[%s3612_s1 + $0x3d8] ss:$12 sps:$4 sm:$0xff]  }
  0x30   :  { %1736 = vmatpush1.bf16.msra.mxu0 %v2547_v50  ;;  %1696 = vmatprep.subr.bf16.mxu1 %v2548_v51  ;;  %v2626_v50 = vld [vmem:[%s3612_s1 + $0x3f0] ss:$12 sps:$4 sm:$0xff]   ;;  %v2630_v51 = vld [vmem:[%s3612_s1 + $0x1b8] ss:$12 sps:$4 sm:$0xff]  }
  0x31   :  { %1737 = vmatprep.subr.bf16.mxu0 %v2550_v53  ;;  %v2633_v53 = vld [vmem:[%s3612_s1 + $0x40c] ss:$12 sps:$4 sm:$0xff]  }
  0x33   :  { %1697 = vmatpush1.bf16.msra.mxu1 %v2552_v54  ;;  %v2631_v54 = vld [vmem:[%s3612_s1 + $0x408] ss:$12 sps:$4 sm:$0xff]  }
  0x34   :  { %1738 = vmatpush1.bf16.msra.mxu0 %v2553_v55  ;;  %1698 = vmatprep.subr.bf16.mxu1 %v2554_v56  ;;  %v2635_v55 = vld [vmem:[%s3612_s1 + $0x1d0] ss:$12 sps:$4 sm:$0xff]  }
  0x35   :  { %1739 = vmatprep.subr.bf16.mxu0 %v2556_v57  ;;  %v2638_v56 = vld [vmem:[%s3612_s1 + $0x424] ss:$12 sps:$4 sm:$0xff]   ;;  %v2639_v57 = vld [vmem:[%s3612_s1 + $0x2a8] ss:$12 sps:$4 sm:$0xff]  }
  0x37   :  { %1699 = vmatpush1.bf16.msra.mxu1 %v2558_v58  ;;  %v2636_v58 = vld [vmem:[%s3612_s1 + $0x420] ss:$12 sps:$4 sm:$0xff]  }
  0x38   :  { %1740 = vmatpush1.bf16.msra.mxu0 %v2559_v59  ;;  %1700 = vmatprep.subr.bf16.mxu1 %v2560_v60  ;;  %v2640_v59 = vld [vmem:[%s3612_s1 + $0x1e8] ss:$12 sps:$4 sm:$0xff]  }
  0x39   :  { %1741 = vmatprep.subr.bf16.mxu0 %v2562_v61  ;;  %v2643_v60 = vld [vmem:[%s3612_s1 + $0x43c] ss:$12 sps:$4 sm:$0xff]   ;;  %v2644_v61 = vld [vmem:[%s3612_s1 + $0x2c0] ss:$12 sps:$4 sm:$0xff]  }
  0x3b   :  { %1701 = vmatpush1.bf16.msra.mxu1 %v2564_v62  ;;  %v2641_v62 = vld [vmem:[%s3612_s1 + $0x438] ss:$12 sps:$4 sm:$0xff]  }
  0x3c   :  { %1742 = vmatpush1.bf16.msra.mxu0 %v2565_v63  ;;  %1702 = vmatprep.subr.bf16.mxu1 %v2566_v0  ;;  %v2645_v63 = vld [vmem:[%s3612_s1 + $0x200] ss:$12 sps:$4 sm:$0xff]  }
  0x3d   :  { %1743 = vmatprep.subr.bf16.mxu0 %v2568_v1  ;;  %v2648_v0 = vld [vmem:[%s3612_s1 + $0x454] ss:$12 sps:$4 sm:$0xff]   ;;  %v2649_v1 = vld [vmem:[%s3612_s1 + $0x2d8] ss:$12 sps:$4 sm:$0xff]  }
  0x3f   :  { %1703 = vmatpush1.bf16.msra.mxu1 %v2570_v2  ;;  %v2646_v2 = vld [vmem:[%s3612_s1 + $0x450] ss:$12 sps:$4 sm:$0xff]  }
  0x40   :  { %1744 = vmatpush1.bf16.msra.mxu0 %v2571_v3  ;;  %2350 = vmatprep.subr.bf16.mxu1 %v2579_v5  ;;  %v2650_v3 = vld [vmem:[%s3612_s1 + $0x218] ss:$12 sps:$4 sm:$0xff]   ;;  %v2654_v5 = vld [vmem:[%s3612_s1 + $0x2f0] ss:$12 sps:$4 sm:$0xff]  }
  0x41   :  { %1754 = vmatprep.subr.bf16.mxu0 %v2578_v4  ;;  %v2653_v4 = vld [vmem:[%s3612_s1 + $0x46c] ss:$12 sps:$4 sm:$0xff]  }
  0x42   :  { %1705 = vmatmul.mubr.bf16.vlgmr.msra.gmra.mrb[0].mxu1 %v3036_v6 }
  0x43   :  { %1746 = vmatmul.mubr.bf16.vlgmr.msra.gmra.mrb[0].mxu0 %v3038_v7  ;;  %2351 = vmatpush3.bf16.msra.mxu1 %v2580_v9  ;;  %v2660_v9 = vld [vmem:[%s3612_s1 + $0x484] ss:$12 sps:$4 sm:$0xff]  }
  0x44   :  { %1755 = vmatpush1.bf16.msra.mxu0 %v2576_v8  ;;  %2352 = vmatprep.subr.bf16.mxu1 %v2584_v11  ;;  %v2655_v8 = vld [vmem:[%s3612_s1 + $0x230] ss:$12 sps:$4 sm:$0xff]   ;;  %v2658_v11 = vld [vmem:[%s3612_s1 + $0x480] ss:$12 sps:$4 sm:$0xff]  }
  0x45   :  { %1756 = vmatprep.subr.bf16.mxu0 %v2583_v10  ;;  %1909 = vmatprep.mubr.bf16.mxu1 %v2970_v48  ;;  %v2628_v48 = vld [vmem:[%s3612_s1 + $0x3f4] ss:$12 sps:$4 sm:$0xff]  }
  0x46   :  { %1786 = vmatprep.mubr.bf16.mxu0 %v3158_v45  ;;  %v2661_v10 = vld [vmem:[%s3612_s1 + $0x3c8] ss:$12 sps:$4 sm:$0xff]  }
  0x47   :  { %2353 = vmatpush3.bf16.msra.mxu1 %v2585_v13  ;;  %v2662_v13 = vld [vmem:[%s3612_s1 + $0x308] ss:$12 sps:$4 sm:$0xff]  }
  0x48   :  { %1757 = vmatpush1.bf16.msra.mxu0 %v2581_v12  ;;  %2354 = vmatprep.subr.bf16.mxu1 %v2589_v15  ;;  %v3252_v12 = vcombine.low %v3151_v43, %v3151_v43  ;;  %v2666_v15 = vld [vmem:[%s3612_s1 + $0x3e0] ss:$12 sps:$4 sm:$0xff]   ;;  %v2700_v43 = vld [vmem:[%s3612_s1 + $0x544] ss:$12 sps:$4 sm:$0xff]  }
  0x49   :  { %1758 = vmatprep.subr.bf16.mxu0 %v2588_v14  ;;  %v2665_v14 = vld [vmem:[%s3612_s1 + $0x49c] ss:$12 sps:$4 sm:$0xff]  }
  0x4b   :  { %2355 = vmatpush3.bf16.msra.mxu1 %v2590_v17  ;;  %v2667_v17 = vld [vmem:[%s3612_s1 + $0x320] ss:$12 sps:$4 sm:$0xff]  }
  0x4c   :  { %1759 = vmatpush1.bf16.msra.mxu0 %v2586_v16  ;;  %2356 = vmatprep.subr.bf16.mxu1 %v2594_v19  ;;  %v2663_v16 = vld [vmem:[%s3612_s1 + $0x498] ss:$12 sps:$4 sm:$0xff]   ;;  %v2668_v19 = vld [vmem:[%s3612_s1 + $0x4b0] ss:$12 sps:$4 sm:$0xff]  }
  0x4d   :  { %1760 = vmatprep.subr.bf16.mxu0 %v2593_v18  ;;  %v2670_v18 = vld [vmem:[%s3612_s1 + $0x4b4] ss:$12 sps:$4 sm:$0xff]  }
  0x4f   :  { %2357 = vmatpush3.bf16.msra.mxu1 %v2595_v21  ;;  %v2675_v21 = vld [vmem:[%s3612_s1 + $0x4cc] ss:$12 sps:$4 sm:$0xff]  }
  0x50   :  { %1761 = vmatpush1.bf16.msra.mxu0 %v2591_v20  ;;  %2358 = vmatprep.subr.bf16.mxu1 %v2599_v23  ;;  %v2672_v20 = vld [vmem:[%s3612_s1 + $0x338] ss:$12 sps:$4 sm:$0xff]   ;;  %v2673_v23 = vld [vmem:[%s3612_s1 + $0x4c8] ss:$12 sps:$4 sm:$0xff]  }
  0x51   :  { %1762 = vmatprep.subr.bf16.mxu0 %v2598_v22  ;;  %v2676_v22 = vld [vmem:[%s3612_s1 + $0x410] ss:$12 sps:$4 sm:$0xff]  }
  0x53   :  { %2359 = vmatpush3.bf16.msra.mxu1 %v2600_v25  ;;  %v2680_v25 = vld [vmem:[%s3612_s1 + $0x4e4] ss:$12 sps:$4 sm:$0xff]  }
  0x54   :  { %1763 = vmatpush1.bf16.msra.mxu0 %v2596_v24  ;;  %2360 = vmatprep.subr.bf16.mxu1 %v2604_v27  ;;  %v2677_v24 = vld [vmem:[%s3612_s1 + $0x350] ss:$12 sps:$4 sm:$0xff]   ;;  %v2678_v27 = vld [vmem:[%s3612_s1 + $0x4e0] ss:$12 sps:$4 sm:$0xff]  }
  0x55   :  { %1764 = vmatprep.subr.bf16.mxu0 %v2603_v26  ;;  %v2681_v26 = vld [vmem:[%s3612_s1 + $0x428] ss:$12 sps:$4 sm:$0xff]  }
  0x57   :  { %2361 = vmatpush3.bf16.msra.mxu1 %v2605_v29  ;;  %v2685_v29 = vld [vmem:[%s3612_s1 + $0x4fc] ss:$12 sps:$4 sm:$0xff]  }
  0x58   :  { %1765 = vmatpush1.bf16.msra.mxu0 %v2601_v28  ;;  %2362 = vmatprep.subr.bf16.mxu1 %v2609_v31  ;;  %v2682_v28 = vld [vmem:[%s3612_s1 + $0x368] ss:$12 sps:$4 sm:$0xff]   ;;  %v2683_v31 = vld [vmem:[%s3612_s1 + $0x4f8] ss:$12 sps:$4 sm:$0xff]  }
  0x59   :  { %1766 = vmatprep.subr.bf16.mxu0 %v2608_v30  ;;  %v2686_v30 = vld [vmem:[%s3612_s1 + $0x440] ss:$12 sps:$4 sm:$0xff]  }
  0x5b   :  { %2363 = vmatpush3.bf16.msra.mxu1 %v2610_v33  ;;  %v2690_v33 = vld [vmem:[%s3612_s1 + $0x514] ss:$12 sps:$4 sm:$0xff]  }
  0x5c   :  { %1767 = vmatpush1.bf16.msra.mxu0 %v2606_v32  ;;  %2364 = vmatprep.subr.bf16.mxu1 %v2614_v35  ;;  %v2687_v32 = vld [vmem:[%s3612_s1 + $0x380] ss:$12 sps:$4 sm:$0xff]   ;;  %v3329_v35 = vld [vmem:[%s3613_s0 + $0x18] sm:$0xff] }
  0x5d   :  { %1768 = vmatprep.subr.bf16.mxu0 %v2613_v34  ;;  %v2691_v34 = vld [vmem:[%s3612_s1 + $0x458] ss:$12 sps:$4 sm:$0xff]  }
  0x5f   :  { %2365 = vmatpush3.bf16.msra.mxu1 %v2615_v37  ;;  %v2692_v37 = vld [vmem:[%s3612_s1 + $0x398] ss:$12 sps:$4 sm:$0xff]  }
  0x60   :  { %1769 = vmatpush1.bf16.msra.mxu0 %v2611_v36  ;;  %2372 = vmatprep.subr.bf16.mxu1 %v2619_v39  ;;  %v2688_v36 = vld [vmem:[%s3612_s1 + $0x510] ss:$12 sps:$4 sm:$0xff]   ;;  %v2695_v39 = vld [vmem:[%s3612_s1 + $0x52c] ss:$12 sps:$4 sm:$0xff]  }
  0x61   :  { %1770 = vmatprep.subr.bf16.mxu0 %v2618_v38  ;;  %v2103_v38 = vcombine.high %v3329_v35, %v3329_v35 }
  0x62   :  { %1910 = vmatmul.mubr.bf16.vlgmr.msra.gmra.mrb[4].mxu1 %v3036_v6  ;;  %v2651_v6 = vld [vmem:[%s3612_s1 + $0x468] ss:$12 sps:$4 sm:$0xff]  }
  0x63   :  { %2373 = vmatpush3.bf16.msra.mxu1 %v2620_v41  ;;  %1949 = vmatprep.mubr.bf16.mxu1 %v2981_v52  ;;  %v2634_v52 = vld [vmem:[%s3612_s1 + $0x290] ss:$12 sps:$4 sm:$0xff]   ;;  %v2693_v41 = vld [vmem:[%s3612_s1 + $0x528] ss:$12 sps:$4 sm:$0xff]  }
  0x64   :  { %1771 = vmatpush1.bf16.msra.mxu0 %v2616_v40  ;;  %2374 = vmatprep.subr.bf16.mxu1 %v2624_v44  ;;  %v2696_v40 = vld [vmem:[%s3612_s1 + $0x470] ss:$12 sps:$4 sm:$0xff]   ;;  %v2701_v44 = vld [vmem:[%s3612_s1 + $0x548] ss:$12 sps:$4 sm:$0xff]  }
  0x65   :  { %1772 = vmatprep.subr.bf16.mxu0 %v2623_v42  ;;  %v2697_v42 = vld [vmem:[%s3612_s1 + $0x3b0] ss:$12 sps:$4 sm:$0xff]  }
  0x67   :  { %2375 = vmatpush3.bf16.msra.mxu1 %v2625_v47  ;;  %v2705_v47 = vld [vmem:[%s3612_s1 + $0x55c] ss:$12 sps:$4 sm:$0xff]  }
  0x68   :  { %1773 = vmatpush1.bf16.msra.mxu0 %v2621_v46  ;;  %2376 = vmatprep.subr.bf16.mxu1 %v2629_v49  ;;  %v2702_v46 = vld [vmem:[%s3612_s1 + $0x488] ss:$12 sps:$4 sm:$0xff]   ;;  %v2703_v49 = vld [vmem:[%s3612_s1 + $0x558] ss:$12 sps:$4 sm:$0xff]  }
  0x69   :  { %1774 = vmatprep.subr.bf16.mxu0 %v2628_v48  ;;  %v2706_v48 = vld [vmem:[%s3612_s1 + $0x560] ss:$12 sps:$4 sm:$0xff]  }
  0x6b   :  { %2377 = vmatpush3.bf16.msra.mxu1 %v2630_v51  ;;  %v2710_v51 = vld [vmem:[%s3612_s1 + $0x574] ss:$12 sps:$4 sm:$0xff]  }
  0x6c   :  { %1775 = vmatpush1.bf16.msra.mxu0 %v2626_v50  ;;  %2378 = vmatprep.subr.bf16.mxu1 %v2634_v52  ;;  %v2707_v50 = vld [vmem:[%s3612_s1 + $0x4a0] ss:$12 sps:$4 sm:$0xff]   ;;  %v2708_v52 = vld [vmem:[%s3612_s1 + $0x570] ss:$12 sps:$4 sm:$0xff]  }
  0x6d   :  { %1776 = vmatprep.subr.bf16.mxu0 %v2633_v53  ;;  %v2711_v53 = vld [vmem:[%s3612_s1 + $0x578] ss:$12 sps:$4 sm:$0xff]  }
  0x6f   :  { %2379 = vmatpush3.bf16.msra.mxu1 %v2635_v55  ;;  %v2715_v55 = vld [vmem:[%s3612_s1 + $0x58c] ss:$12 sps:$4 sm:$0xff]  }
  0x70   :  { %1777 = vmatpush1.bf16.msra.mxu0 %v2631_v54  ;;  %2380 = vmatprep.subr.bf16.mxu1 %v2639_v57  ;;  %v2712_v54 = vld [vmem:[%s3612_s1 + $0x4b8] ss:$12 sps:$4 sm:$0xff]   ;;  %v2713_v57 = vld [vmem:[%s3612_s1 + $0x588] ss:$12 sps:$4 sm:$0xff]  }
  0x71   :  { %1778 = vmatprep.subr.bf16.mxu0 %v2638_v56  ;;  %v2716_v56 = vld [vmem:[%s3612_s1 + $0x590] ss:$12 sps:$4 sm:$0xff]  }
  0x73   :  { %2381 = vmatpush3.bf16.msra.mxu1 %v2640_v59  ;;  %v2720_v59 = vld [vmem:[%s3612_s1 + $0x5a4] ss:$12 sps:$4 sm:$0xff]  }
  0x74   :  { %1779 = vmatpush1.bf16.msra.mxu0 %v2636_v58  ;;  %2382 = vmatprep.subr.bf16.mxu1 %v2644_v61  ;;  %v2717_v58 = vld [vmem:[%s3612_s1 + $0x4d0] ss:$12 sps:$4 sm:$0xff]   ;;  %v2718_v61 = vld [vmem:[%s3612_s1 + $0x5a0] ss:$12 sps:$4 sm:$0xff]  }
  0x75   :  { %1780 = vmatprep.subr.bf16.mxu0 %v2643_v60  ;;  %v2721_v60 = vld [vmem:[%s3612_s1 + $0x5a8] ss:$12 sps:$4 sm:$0xff]  }
  0x77   :  { %2383 = vmatpush3.bf16.msra.mxu1 %v2645_v63  ;;  %v2725_v63 = vld [vmem:[%s3612_s1 + $0x5bc] ss:$12 sps:$4 sm:$0xff]  }
  0x78   :  { %1781 = vmatpush1.bf16.msra.mxu0 %v2641_v62  ;;  %2384 = vmatprep.subr.bf16.mxu1 %v2649_v1  ;;  %v2722_v62 = vld [vmem:[%s3612_s1 + $0x4e8] ss:$12 sps:$4 sm:$0xff]   ;;  %v2723_v1 = vld [vmem:[%s3612_s1 + $0x5b8] ss:$12 sps:$4 sm:$0xff]  }
  0x79   :  { %1782 = vmatprep.subr.bf16.mxu0 %v2648_v0  ;;  %v2726_v0 = vld [vmem:[%s3612_s1 + $0x5c0] ss:$12 sps:$4 sm:$0xff]  }
  0x7b   :  { %2385 = vmatpush3.bf16.msra.mxu1 %v2650_v3  ;;  %v2730_v3 = vld [vmem:[%s3612_s1 + $0x5d4] ss:$12 sps:$4 sm:$0xff]  }
  0x7c   :  { %1783 = vmatpush1.bf16.msra.mxu0 %v2646_v2  ;;  %2386 = vmatprep.subr.bf16.mxu1 %v2654_v5  ;;  %v2727_v2 = vld [vmem:[%s3612_s1 + $0x500] ss:$12 sps:$4 sm:$0xff]   ;;  %v2728_v5 = vld [vmem:[%s3612_s1 + $0x5d0] ss:$12 sps:$4 sm:$0xff]  }
  0x7d   :  { %1784 = vmatprep.subr.bf16.mxu0 %v2653_v4  ;;  %v2731_v4 = vld [vmem:[%s3612_s1 + $0x5d8] ss:$12 sps:$4 sm:$0xff]  }
  0x7f   :  { %2387 = vmatpush3.bf16.msra.mxu1 %v2655_v8  ;;  %v2735_v8 = vld [vmem:[%s3612_s1 + $0x5ec] ss:$12 sps:$4 sm:$0xff]  }
  0x80   :  { %1785 = vmatpush1.bf16.msra.mxu0 %v2651_v6  ;;  %2394 = vmatprep.subr.bf16.mxu1 %v2661_v10  ;;  %v2732_v6 = vld [vmem:[%s3612_s1 + $0x518] ss:$12 sps:$4 sm:$0xff]   ;;  %v2733_v10 = vld [vmem:[%s3612_s1 + $0x5e8] ss:$12 sps:$4 sm:$0xff]  }
  0x81   :  { %1795 = vmatprep.subr.bf16.mxu0 %v2660_v9  ;;  %v2736_v9 = vld [vmem:[%s3612_s1 + $0x5f0] ss:$12 sps:$4 sm:$0xff]  }
  0x82   :  { %1950 = vmatmul.mubr.bf16.vlgmr.msra.gmra.mrb[8].mxu1 %v3038_v7  ;;  %v2671_v7 = vld [vmem:[%s3612_s1 + $0x3f8] ss:$12 sps:$4 sm:$0xff]  }
  0x83   :  { %1787 = vmatmul.mubr.bf16.vlgmr.msra.gmra.mrb[0].mxu0 %v3252_v12  ;;  %2395 = vmatpush3.bf16.msra.mxu1 %v2662_v13  ;;  %v2743_v13 = vld [vmem:[%s3612_s1 + $0x6c8] ss:$12 sps:$4 sm:$0xff]  }
  0x84   :  { %1796 = vmatpush1.bf16.msra.mxu0 %v2658_v11  ;;  %2396 = vmatprep.subr.bf16.mxu1 %v2666_v15  ;;  %v2737_v11 = vld [vmem:[%s3612_s1 + $0x530] ss:$12 sps:$4 sm:$0xff]   ;;  %v3459_v15 = vld [vmem:[%s3613_s0 + $0x20] sm:$0xff] }
  0x85   :  { %1797 = vmatprep.subr.bf16.mxu0 %v2665_v14  ;;  %1989 = vmatprep.mubr.bf16.mxu1 %v3158_v45  ;;  %v2698_v45 = vld [vmem:[%s3612_s1 + $0x540] ss:$12 sps:$4 sm:$0xff]   ;;  %v2102_v14 = vcombine.low %v3329_v35, %v3329_v35 }
  0x86   :  { %1827 = vmatprep.mubr.bf16.mxu0 %v2103_v38  ;;  %v2768_v35 = vld [vmem:[%s3612_s1 + $0x740] ss:$12 sps:$4 sm:$0xff]  }
  0x87   :  { %2397 = vmatpush3.bf16.msra.mxu1 %v2667_v17  ;;  %v2744_v17 = vld [vmem:[%s3612_s1 + $0x608] ss:$12 sps:$4 sm:$0xff]  }
  0x88   :  { %1798 = vmatpush1.bf16.msra.mxu0 %v2663_v16  ;;  %2398 = vmatprep.subr.bf16.mxu1 %v2671_v7  ;;  %v2740_v16 = vld [vmem:[%s3612_s1 + $0x600] ss:$12 sps:$4 sm:$0xff]  }
  0x89   :  { %1799 = vmatprep.subr.bf16.mxu0 %v2670_v18  ;;  %v2747_v18 = vld [vmem:[%s3612_s1 + $0x61c] ss:$12 sps:$4 sm:$0xff]   ;;  %v2748_v7 = vld [vmem:[%s3612_s1 + $0x6e0] ss:$12 sps:$4 sm:$0xff]  }
  0x8b   :  { %2399 = vmatpush3.bf16.msra.mxu1 %v2672_v20  ;;  %v2745_v20 = vld [vmem:[%s3612_s1 + $0x618] ss:$12 sps:$4 sm:$0xff]  }
  0x8c   :  { %1800 = vmatpush1.bf16.msra.mxu0 %v2668_v19  ;;  %2400 = vmatprep.subr.bf16.mxu1 %v2676_v22  ;;  %v2105_v19 = vcombine.high %v3459_v15, %v3459_v15  ;;  %v2752_v22 = vld [vmem:[%s3612_s1 + $0x634] ss:$12 sps:$4 sm:$0xff]  }
  0x8d   :  { %1801 = vmatprep.subr.bf16.mxu0 %v2675_v21  ;;  %v2749_v21 = vld [vmem:[%s3612_s1 + $0x620] ss:$12 sps:$4 sm:$0xff]  }
  0x8f   :  { %2401 = vmatpush3.bf16.msra.mxu1 %v2677_v24  ;;  %v2750_v24 = vld [vmem:[%s3612_s1 + $0x630] ss:$12 sps:$4 sm:$0xff]  }
  0x90   :  { %1802 = vmatpush1.bf16.msra.mxu0 %v2673_v23  ;;  %2402 = vmatprep.subr.bf16.mxu1 %v2681_v26  ;;  %v2753_v23 = vld [vmem:[%s3612_s1 + $0x6f8] ss:$12 sps:$4 sm:$0xff]  }
  0x91   :  { %1803 = vmatprep.subr.bf16.mxu0 %v2680_v25  ;;  %v2754_v25 = vld [vmem:[%s3612_s1 + $0x638] ss:$12 sps:$4 sm:$0xff]  }
  0x92   :  { %v2757_v26 = vld [vmem:[%s3612_s1 + $0x64c] ss:$12 sps:$4 sm:$0xff]  }
  0x93   :  { %2403 = vmatpush3.bf16.msra.mxu1 %v2682_v28  ;;  %v2755_v28 = vld [vmem:[%s3612_s1 + $0x648] ss:$12 sps:$4 sm:$0xff]  }
  0x94   :  { %1804 = vmatpush1.bf16.msra.mxu0 %v2678_v27  ;;  %2404 = vmatprep.subr.bf16.mxu1 %v2686_v30  ;;  %v2758_v27 = vld [vmem:[%s3612_s1 + $0x710] ss:$12 sps:$4 sm:$0xff]  }
  0x95   :  { %1805 = vmatprep.subr.bf16.mxu0 %v2685_v29  ;;  %v2759_v29 = vld [vmem:[%s3612_s1 + $0x650] ss:$12 sps:$4 sm:$0xff]  }
  0x96   :  { %v2762_v30 = vld [vmem:[%s3612_s1 + $0x664] ss:$12 sps:$4 sm:$0xff]  }
  0x97   :  { %2405 = vmatpush3.bf16.msra.mxu1 %v2687_v32  ;;  %v2760_v32 = vld [vmem:[%s3612_s1 + $0x660] ss:$12 sps:$4 sm:$0xff]  }
  0x98   :  { %1806 = vmatpush1.bf16.msra.mxu0 %v2683_v31  ;;  %2406 = vmatprep.subr.bf16.mxu1 %v2691_v34  ;;  %v2763_v31 = vld [vmem:[%s3612_s1 + $0x728] ss:$12 sps:$4 sm:$0xff]  }
  0x99   :  { %1807 = vmatprep.subr.bf16.mxu0 %v2690_v33  ;;  %v2764_v33 = vld [vmem:[%s3612_s1 + $0x668] ss:$12 sps:$4 sm:$0xff]  }
  0x9a   :  { %v2767_v34 = vld [vmem:[%s3612_s1 + $0x67c] ss:$12 sps:$4 sm:$0xff]  }
  0x9b   :  { %2407 = vmatpush3.bf16.msra.mxu1 %v2692_v37  ;;  %v2769_v37 = vld [vmem:[%s3612_s1 + $0x680] ss:$12 sps:$4 sm:$0xff]  }
  0x9c   :  { %1808 = vmatpush1.bf16.msra.mxu0 %v2688_v36  ;;  %2408 = vmatprep.subr.bf16.mxu1 %v2696_v40  ;;  %v2765_v36 = vld [vmem:[%s3612_s1 + $0x678] ss:$12 sps:$4 sm:$0xff]   ;;  %v2770_v40 = vld [vmem:[%s3612_s1 + $0x690] ss:$12 sps:$4 sm:$0xff]  }
  0x9d   :  { %1809 = vmatprep.subr.bf16.mxu0 %v2695_v39  ;;  %v2773_v39 = vld [vmem:[%s3612_s1 + $0x758] ss:$12 sps:$4 sm:$0xff]  }
  0x9f   :  { %2409 = vmatpush3.bf16.msra.mxu1 %v2697_v42  ;;  %v2777_v42 = vld [vmem:[%s3612_s1 + $0x6ac] ss:$12 sps:$4 sm:$0xff]  }
  0xa0   :  { %1810 = vmatpush1.bf16.msra.mxu0 %v2693_v41  ;;  %2416 = vmatprep.subr.bf16.mxu1 %v2701_v44  ;;  %v2774_v41 = vld [vmem:[%s3612_s1 + $0x698] ss:$12 sps:$4 sm:$0xff]   ;;  %v2775_v44 = vld [vmem:[%s3612_s1 + $0x6a8] ss:$12 sps:$4 sm:$0xff]  }
  0xa1   :  { %1811 = vmatprep.subr.bf16.mxu0 %v2700_v43  ;;  %v2778_v43 = vld [vmem:[%s3612_s1 + $0x770] ss:$12 sps:$4 sm:$0xff]  }
  0xa2   :  { %1990 = vmatmul.mubr.bf16.vlgmr.msra.gmra.mrb[12].mxu1 %v3252_v12  ;;  %v2742_v12 = vld [vmem:[%s3612_s1 + $0x604] ss:$12 sps:$4 sm:$0xff]  }
  0xa3   :  { %2417 = vmatpush3.bf16.msra.mxu1 %v2702_v46  ;;  %2029 = vmatprep.mubr.bf16.mxu1 %v2103_v38  ;;  %v2772_v38 = vld [vmem:[%s3612_s1 + $0x694] ss:$12 sps:$4 sm:$0xff]   ;;  %v2784_v46 = vld [vmem:[%s3612_s1 + $0x6c4] ss:$12 sps:$4 sm:$0xff]  }
  0xa4   :  { %1812 = vmatpush1.bf16.msra.mxu0 %v2698_v45  ;;  %2418 = vmatprep.subr.bf16.mxu1 %v2706_v48  ;;  %v2779_v45 = vld [vmem:[%s3612_s1 + $0x6b0] ss:$12 sps:$4 sm:$0xff]   ;;  %v2782_v48 = vld [vmem:[%s3612_s1 + $0x6c0] ss:$12 sps:$4 sm:$0xff]  }
  0xa5   :  { %1813 = vmatprep.subr.bf16.mxu0 %v2705_v47  ;;  %v2104_v47 = vcombine.low %v3459_v15, %v3459_v15 }
  0xa7   :  { %2419 = vmatpush3.bf16.msra.mxu1 %v2707_v50  ;;  %v2785_v50 = vld [vmem:[%s3612_s1 + $0x6d8] ss:$12 sps:$4 sm:$0xff]  }
  0xa8   :  { %1814 = vmatpush1.bf16.msra.mxu0 %v2703_v49  ;;  %2420 = vmatprep.subr.bf16.mxu1 %v2711_v53  ;;  %v2787_v49 = vld [vmem:[%s3612_s1 + $0x6dc] ss:$12 sps:$4 sm:$0xff]  }
  0xa9   :  { %1815 = vmatprep.subr.bf16.mxu0 %v2710_v51  ;;  %v2790_v51 = vld [vmem:[%s3612_s1 + $0x6f4] ss:$12 sps:$4 sm:$0xff]   ;;  %v2788_v53 = vld [vmem:[%s3612_s1 + $0x6f0] ss:$12 sps:$4 sm:$0xff]  }
  0xab   :  { %2421 = vmatpush3.bf16.msra.mxu1 %v2712_v54  ;;  %v2791_v54 = vld [vmem:[%s3612_s1 + $0x708] ss:$12 sps:$4 sm:$0xff]  }
  0xac   :  { %1816 = vmatpush1.bf16.msra.mxu0 %v2708_v52  ;;  %2422 = vmatprep.subr.bf16.mxu1 %v2716_v56  ;;  %v2793_v52 = vld [vmem:[%s3612_s1 + $0x70c] ss:$12 sps:$4 sm:$0xff]  }
  0xad   :  { %1817 = vmatprep.subr.bf16.mxu0 %v2715_v55  ;;  %v2796_v55 = vld [vmem:[%s3612_s1 + $0x724] ss:$12 sps:$4 sm:$0xff]   ;;  %v2794_v56 = vld [vmem:[%s3612_s1 + $0x720] ss:$12 sps:$4 sm:$0xff]  }
  0xaf   :  { %2423 = vmatpush3.bf16.msra.mxu1 %v2717_v58  ;;  %v2797_v58 = vld [vmem:[%s3612_s1 + $0x738] ss:$12 sps:$4 sm:$0xff]  }
  0xb0   :  { %1818 = vmatpush1.bf16.msra.mxu0 %v2713_v57  ;;  %2424 = vmatprep.subr.bf16.mxu1 %v2721_v60  ;;  %v2799_v57 = vld [vmem:[%s3612_s1 + $0x73c] ss:$12 sps:$4 sm:$0xff]  }
  0xb1   :  { %1819 = vmatprep.subr.bf16.mxu0 %v2720_v59  ;;  %v2802_v59 = vld [vmem:[%s3612_s1 + $0x754] ss:$12 sps:$4 sm:$0xff]   ;;  %v2800_v60 = vld [vmem:[%s3612_s1 + $0x750] ss:$12 sps:$4 sm:$0xff]  }
  0xb3   :  { %2425 = vmatpush3.bf16.msra.mxu1 %v2722_v62  ;;  %v2803_v62 = vld [vmem:[%s3612_s1 + $0x768] ss:$12 sps:$4 sm:$0xff]  }
  0xb4   :  { %1820 = vmatpush1.bf16.msra.mxu0 %v2718_v61  ;;  %2426 = vmatprep.subr.bf16.mxu1 %v2726_v0  ;;  %v2805_v61 = vld [vmem:[%s3612_s1 + $0x76c] ss:$12 sps:$4 sm:$0xff]  }
  0xb5   :  { %1821 = vmatprep.subr.bf16.mxu0 %v2725_v63 }
  0xb7   :  { %2427 = vmatpush3.bf16.msra.mxu1 %v2727_v2 }
  0xb8   :  { %1822 = vmatpush1.bf16.msra.mxu0 %v2723_v1  ;;  %2428 = vmatprep.subr.bf16.mxu1 %v2731_v4 }
  0xb9   :  { %1823 = vmatprep.subr.bf16.mxu0 %v2730_v3 }
  0xbb   :  { %2429 = vmatpush3.bf16.msra.mxu1 %v2732_v6 }
  0xbc   :  { %1824 = vmatpush1.bf16.msra.mxu0 %v2728_v5  ;;  %2430 = vmatprep.subr.bf16.mxu1 %v2736_v9  ;;  %v342_v9 = vlaneseq }
  0xbd   :  { %1825 = vmatprep.subr.bf16.mxu0 %v2735_v8 }
  0xbf   :  { %2431 = vmatpush3.bf16.msra.mxu1 %v2737_v11 }
  0xc0   :  { %1826 = vmatpush1.bf16.msra.mxu0 %v2733_v10  ;;  %2438 = vmatprep.subr.bf16.mxu1 %v2743_v13  ;;  %v343_v10 = vshrl.u32 %v342_v9, 7 }
  0xc1   :  { %1836 = vmatprep.subr.bf16.mxu0 %v2742_v12  ;;  %v340_v12 = vld [vmem:[%s3614_s2] sm:$0x7] }
  0xc2   :  { %2030 = vmatmul.mubr.bf16.vlgmr.msra.gmra.mrb[16].mxu1 %v2102_v14  ;;  %v352_v11 = vsub.s32 2, %v343_v10 }
  0xc3   :  { %1828 = vmatmul.mubr.bf16.vlgmr.msra.gmra.mrb[0].mxu0 %v2102_v14  ;;  %2439 = vmatpush3.bf16.msra.mxu1 %v2744_v17 }
  0xc4   :  { %1837 = vmatpush1.bf16.msra.mxu0 %v2740_v16  ;;  %2440 = vmatprep.subr.bf16.mxu1 %v2748_v7  ;;  %v353_v13 = vrot.slane %v340_v12, %v352_v11 }
  0xc5   :  { %1838 = vmatprep.subr.bf16.mxu0 %v2747_v18  ;;  %2069 = vmatprep.mubr.bf16.mxu1 %v2105_v19 }
  0xc6   :  { %1868 = vmatprep.mubr.bf16.mxu0 %v2105_v19 }
  0xc7   :  { %2441 = vmatpush3.bf16.msra.mxu1 %v2749_v21 }
  0xc8   :  { %1839 = vmatpush1.bf16.msra.mxu0 %v2745_v20  ;;  %2442 = vmatprep.subr.bf16.mxu1 %v2753_v23 }
  0xc9   :  { %1840 = vmatprep.subr.bf16.mxu0 %v2752_v22 }
  0xcb   :  { %2443 = vmatpush3.bf16.msra.mxu1 %v2754_v25 }
  0xcc   :  { %1841 = vmatpush1.bf16.msra.mxu0 %v2750_v24  ;;  %2444 = vmatprep.subr.bf16.mxu1 %v2758_v27 }
  0xcd   :  { %1842 = vmatprep.subr.bf16.mxu0 %v2757_v26 }
  0xcf   :  { %2445 = vmatpush3.bf16.msra.mxu1 %v2759_v29 }
  0xd0   :  { %1843 = vmatpush1.bf16.msra.mxu0 %v2755_v28  ;;  %2446 = vmatprep.subr.bf16.mxu1 %v2763_v31 }
  0xd1   :  { %1844 = vmatprep.subr.bf16.mxu0 %v2762_v30 }
  0xd3   :  { %2447 = vmatpush3.bf16.msra.mxu1 %v2764_v33 }
  0xd4   :  { %1845 = vmatpush1.bf16.msra.mxu0 %v2760_v32  ;;  %2448 = vmatprep.subr.bf16.mxu1 %v2768_v35 }
  0xd5   :  { %1846 = vmatprep.subr.bf16.mxu0 %v2767_v34 }
  0xd7   :  { %2449 = vmatpush3.bf16.msra.mxu1 %v2769_v37 }
  0xd8   :  { %1847 = vmatpush1.bf16.msra.mxu0 %v2765_v36  ;;  %2450 = vmatprep.subr.bf16.mxu1 %v2773_v39  ;;  %v344_v39 = vsub.s32 0, %v343_v10 }
  0xd9   :  { %1848 = vmatprep.subr.bf16.mxu0 %v2772_v38 }
  0xdb   :  { %2451 = vmatpush3.bf16.msra.mxu1 %v2774_v41  ;;  %v345_v41 = vrot.slane %v340_v12, %v344_v39 }
  0xdc   :  { %1849 = vmatpush1.bf16.msra.mxu0 %v2770_v40  ;;  %2452 = vmatprep.subr.bf16.mxu1 %v2778_v43  ;;  %v348_v40 = vsub.s32 1, %v343_v10 }
  0xdd   :  { %1850 = vmatprep.subr.bf16.mxu0 %v2777_v42 }
  0xde   :  { %v349_v42 = vrot.slane %v340_v12, %v348_v40 }
  0xdf   :  { %2453 = vmatpush3.bf16.msra.mxu1 %v2779_v45 }
  0xe0   :  { %1851 = vmatpush1.bf16.msra.mxu0 %v2775_v44 }
  0xe1   :  { %1852 = vmatprep.subr.bf16.mxu0 %v2784_v46 }
  0xe2   :  { %2070 = vmatmul.mubr.bf16.vlgmr.msra.gmra.mrb[20].mxu1 %v2104_v47 }
  0xe4   :  { %1853 = vmatpush1.bf16.msra.mxu0 %v2782_v48 }
  0xe5   :  { %1854 = vmatprep.subr.bf16.mxu0 %v2787_v49 }
  0xe8   :  { %1855 = vmatpush1.bf16.msra.mxu0 %v2785_v50 }
  0xe9   :  { %1856 = vmatprep.subr.bf16.mxu0 %v2790_v51 }
  0xec   :  { %1857 = vmatpush1.bf16.msra.mxu0 %v2788_v53 }
  0xed   :  { %1858 = vmatprep.subr.bf16.mxu0 %v2793_v52 }
  0xf0   :  { %1859 = vmatpush1.bf16.msra.mxu0 %v2791_v54 }
  0xf1   :  { %1860 = vmatprep.subr.bf16.mxu0 %v2796_v55 }
  0xf4   :  { %1861 = vmatpush1.bf16.msra.mxu0 %v2794_v56 }
  0xf5   :  { %1862 = vmatprep.subr.bf16.mxu0 %v2799_v57 }
  0xf8   :  { %1863 = vmatpush1.bf16.msra.mxu0 %v2797_v58 }
  0xf9   :  { %1864 = vmatprep.subr.bf16.mxu0 %v2802_v59 }
  0xfc   :  { %1865 = vmatpush1.bf16.msra.mxu0 %v2800_v60 }
  0xfd   :  { %1866 = vmatprep.subr.bf16.mxu0 %v2805_v61 }
 0x100   :  { %1867 = vmatpush1.bf16.msra.mxu0 %v2803_v62 }
 0x103   :  { %1869 = vmatmul.mubr.bf16.vlgmr.msra.gmra.mrb[0].mxu0 %v2104_v47 }
 0x115   :  { %v1706_v63 = vpop.f32.mrb[0].mxu1 }
 0x116   :  { %v1708_v0 = vpop.f32.mrb[1].mxu1  ;;  %v1707_v43 = vadd.f32 %v1706_v63, %v345_v41 }
 0x117   :  { %v1710_v1 = vpop.f32.mrb[2].mxu1  ;;  %v1709_v44 = vadd.f32 %v1708_v0, %v349_v42 }
 0x118   :  { %v1711_v2 = vpop.f32.mrb[3].mxu1 }
 0x135   :  { %v2366_v3 = vpop.f32.mrb[4].mxu1 }
 0x136   :  { %v2367_v4 = vpop.f32.mrb[5].mxu1 }
 0x137   :  { %v2368_v5 = vadd.f32 %v2367_v4, %v2366_v3  ;;  %v2369_v6 = vpop.f32.mrb[6].mxu1 }
 0x138   :  { %v2370_v8 = vpop.f32.mrb[7].mxu1 }
 0x139   :  { %v1912_v14 = vadd.f32 %v2368_v5, %v353_v13 }
 0x155   :  { %v2388_v15 = vpop.f32.mrb[8].mxu1 }
 0x156   :  { %v2389_v16 = vpop.f32.mrb[9].mxu1 }
 0x157   :  { %v2390_v17 = vadd.f32 %v2389_v16, %v2388_v15  ;;  %v2391_v18 = vpop.f32.mrb[10].mxu1 }
 0x158   :  { %v2392_v7 = vpop.f32.mrb[11].mxu1 }
 0x159   :  { %v1952_v19 = vadd.f32 %v2390_v17, %v1912_v14 }
 0x175   :  { %v2410_v20 = vpop.f32.mrb[12].mxu1 }
 0x176   :  { %v2411_v21 = vpop.f32.mrb[13].mxu1 }
 0x177   :  { %v2412_v22 = vadd.f32 %v2411_v21, %v2410_v20  ;;  %v2413_v23 = vpop.f32.mrb[14].mxu1 }
 0x178   :  { %v2414_v24 = vpop.f32.mrb[15].mxu1 }
 0x179   :  { %v1992_v25 = vadd.f32 %v2412_v22, %v1952_v19 }
 0x195   :  { %v2432_v26 = vpop.f32.mrb[16].mxu1 }
 0x196   :  { %v2433_v27 = vpop.f32.mrb[17].mxu1 }
 0x197   :  { %v2434_v28 = vadd.f32 %v2433_v27, %v2432_v26  ;;  %v2435_v29 = vpop.f32.mrb[18].mxu1 }
 0x198   :  { %v2436_v30 = vpop.f32.mrb[19].mxu1 }
 0x199   :  { %v2032_v31 = vadd.f32 %v2434_v28, %v1992_v25 }
 0x1b5   :  { %v2454_v32 = vpop.f32.mrb[20].mxu1 }
 0x1b6   :  { %v2455_v33 = vpop.f32.mrb[21].mxu1 }
 0x1b7   :  { %v2456_v34 = vadd.f32 %v2455_v33, %v2454_v32  ;;  %v2457_v35 = vpop.f32.mrb[22].mxu1 }
 0x1b8   :  { %v2458_v36 = vpop.f32.mrb[23].mxu1 }
 0x1b9   :  { %v2072_v37 = vadd.f32 %v2456_v34, %v2032_v31 }
 0x1bb   :  { %v2349_v38 = vpack.c.bf16 %v2072_v37, %v2072_v37 }
 0x1bd   :  { %2091 = vst [vmem:[%s3615_s3 + $0x8] sm:$0xf] %v2349_v38 }
 0x1d6   :  { %v1870_v45 = vpop.f32.mrb[0].mxu0 }
 0x1d7   :  { %v2461_v46 = vadd.f32 %v1870_v45, %v1707_v43  ;;  %v1872_v47 = vpop.f32.mrb[1].mxu0 }
 0x1d8   :  { %v2463_v48 = vadd.f32 %v1872_v47, %v1709_v44  ;;  %v1874_v49 = vpop.f32.mrb[2].mxu0 }
 0x1d9   :  { %v1875_v50 = vpop.f32.mrb[3].mxu0 }
 0x1da   :  { %v2348_v51 = vpack.c.bf16 %v2463_v48, %v2461_v46 }
 0x1dc   :  { %2090 = vst [vmem:[%s3615_s3] sm:$0xff] %v2348_v51 }

</bundles_post_ra>
